<compile_context>
chip_gen: v6e
topology: v6e:2x2x1
jax: 0.10.0
libtpu: 0.0.40
codegen_flags: <defaults>
</compile_context>

<pallas_src>
import functools

import jax
import jax.numpy as jnp
from jax.experimental import pallas as pl
from jax.experimental.pallas import tpu as pltpu

_LANE = 128

# Column k gives the (const, A, B, A*B) coefficients of soft gate g_k, i.e.
# g_k(A, B) = M[0,k] + M[1,k]*A + M[2,k]*B + M[3,k]*A*B  (matches the 16-gate
# table in LearnableGate16Array; validated against reference_forward below).
_GATE_COEF = jnp.array(
    [
        [0, 0, 0, 0, 0, 0, 0, 0, 1, 1, 1, 1, 1, 1, 1, 1],       # 1
        [0, 0, 1, 1, 0, 0, 1, 1, -1, -1, 0, 0, -1, -1, 0, 0],   # A
        [0, 0, 0, 0, 1, 1, 1, 1, -1, -1, -1, -1, 0, 0, 0, 0],   # B
        [0, 1, -1, 0, -1, 0, -2, -1, 1, 2, 0, 1, 0, 1, -1, 0],  # A*B
    ],
    dtype=jnp.float32,
)


def _round_up(x, m):
    return ((x + m - 1) // m) * m


# ---------------------------------------------------------------------------
# Fused kernel: the whole network for one (bb, *) batch block.
# ---------------------------------------------------------------------------
def _make_fused_kernel(n_layers):
    def kernel(*refs):
        x_ref = refs[0]
        layer_refs = refs[1:1 + 2 * n_layers]
        sel_ref = refs[1 + 2 * n_layers]
        bias_ref = refs[2 + 2 * n_layers]
        o_ref = refs[3 + 2 * n_layers]

        x = x_ref[...]                                   # (bb, prev) bf16
        for li in range(n_layers):
            conn = layer_refs[2 * li][...]               # (prev_pad, 2*gp) bf16
            coef = layer_refs[2 * li + 1][...]           # (4, gp)          f32
            gp = coef.shape[1]

            # Merged routing matmul: [A | B] = x @ [connA | connB]
            # (bf16 MXU inputs, f32 accumulate).  gp is a multiple of 128 so
            # the A/B split below is lane-tile aligned.
            y = jnp.dot(x.astype(jnp.bfloat16), conn,
                        preferred_element_type=jnp.float32)   # (bb, 2*gp)
            a = y[:, :gp]
            b = y[:, gp:]

            # 16-gate soft mix, folded to its affine form (coef precomputed
            # in the wrapper): out = c0 + c1*A + c2*B + c3*A*B.
            x = (coef[0:1, :] + coef[1:2, :] * a + coef[2:3, :] * b
                 + coef[3:4, :] * (a * b))               # (bb, gp) f32

        # Head: grouped sum over outputs_per_category as a precomputed 0/1
        # selection matmul, -inf bias on padded categories, exact softmax.
        logits = jnp.dot(x.astype(jnp.bfloat16), sel_ref[...],
                         preferred_element_type=jnp.float32) + bias_ref[...]
        m = jnp.max(logits, axis=-1, keepdims=True)
        e = jnp.exp(logits - m)
        o_ref[...] = e / jnp.sum(e, axis=-1, keepdims=True)

    return kernel


def _const_spec(shape):
    # Grid-invariant parameter block: resident in VMEM, single-buffered.
    return pl.BlockSpec(shape, lambda i: (0,) * len(shape),
                        pipeline_mode=pl.Buffered(1))


def _pick_batch_block(batch):
    if batch >= 1024:
        return 256
    if batch >= 128:
        return 128
    return _round_up(max(batch, 8), 8)   # tiny batches: one full padded block


def fused_forward(x, layer_params, sel, bias, num_categories):
    batch = x.shape[0]
    out_pad = sel.shape[1]
    bb = _pick_batch_block(batch)
    padded_batch = _round_up(batch, bb)
    if padded_batch != batch:
        x = jnp.pad(x, ((0, padded_batch - batch), (0, 0)))
    grid = (padded_batch // bb,)

    in_specs = [pl.BlockSpec((bb, x.shape[1]), lambda i: (i, 0))]
    flat_params = []
    for conn, coef in layer_params:
        in_specs.append(_const_spec(conn.shape))
        in_specs.append(_const_spec(coef.shape))
        flat_params += [conn, coef]
    in_specs.append(_const_spec(sel.shape))
    in_specs.append(_const_spec(bias.shape))

    # TODO(synk): for layers whose conn exceeds a few MiB, add N/K grid axes
    # over (2*gp, prev) with a VMEM accumulator instead of whole-layer blocks
    # (needed once sum(params) no longer fits v7x's 64 MiB VMEM).
    out = pl.pallas_call(
        _make_fused_kernel(len(layer_params)),
        out_shape=jax.ShapeDtypeStruct((padded_batch, out_pad), jnp.float32),
        grid=grid,
        in_specs=in_specs,
        out_specs=pl.BlockSpec((bb, out_pad), lambda i: (i, 0)),
        compiler_params=pltpu.CompilerParams(
            dimension_semantics=("parallel",),
            vmem_limit_bytes=32 * 1024 * 1024,
        ),
    )(x, *flat_params, sel, bias)
    return out[:batch, :num_categories]


# ---------------------------------------------------------------------------
# Parameter-only math (hoisted out of the kernel), params, wrappers.
# ---------------------------------------------------------------------------
def _prepare_params(params, input_size, num_categories):
    """Per layer: bf16 [connA|connB] routing matrix (lane-padded) + f32 (4,gp)
    affine gate coefficients.  Plus the head selection matrix and bias."""
    layer_params = []
    prev_true = input_size
    prev_pad = input_size          # first-layer routing rows stay unpadded
    for p in params:
        c, w = p["c"], p["w"]
        g = c.shape[1]
        gp = _round_up(g, _LANE)
        conn = jax.nn.softmax(c, axis=0)                 # exact, f32
        cA = jnp.zeros((prev_pad, gp), jnp.float32).at[:prev_true, :g].set(conn[:, :, 0])
        cB = jnp.zeros((prev_pad, gp), jnp.float32).at[:prev_true, :g].set(conn[:, :, 1])
        conn_cat = jnp.concatenate([cA, cB], axis=1).astype(jnp.bfloat16)
        coef = jnp.zeros((4, gp), jnp.float32).at[:, :g].set(
            _GATE_COEF @ jax.nn.softmax(w, axis=0))
        layer_params.append((conn_cat, coef))
        prev_true, prev_pad = g, gp

    g_last, gp_last = prev_true, prev_pad
    assert g_last % num_categories == 0
    opc = g_last // num_categories
    out_pad = _round_up(num_categories, _LANE)
    r = jnp.arange(gp_last)[:, None]
    col = jnp.arange(out_pad)[None, :]
    sel = ((r < g_last) & (col == (r // opc))).astype(jnp.bfloat16)   # (gp_last, out_pad)
    bias = jnp.where(jnp.arange(out_pad) < num_categories, 0.0, -1e30)
    bias = bias.astype(jnp.float32)[None, :]                          # (1, out_pad)
    return layer_params, sel, bias


def init_params(key, net_architecture, input_size):
    """N(0,1) init matching nn.init.normal_ in the PyTorch module."""
    params = []
    prev = input_size
    for g in net_architecture:
        key, kw, kc = jax.random.split(key, 3)
        w = jax.random.normal(kw, (16, g), dtype=jnp.float32)
        c = jax.random.normal(kc, (prev, g, 2), dtype=jnp.float32)
        params.append({"w": w, "c": c})
        prev = g
    return params


@functools.partial(jax.jit, static_argnames=("num_categories",))
def model_forward(x, params, num_categories):
    layer_params, sel, bias = _prepare_params(params, x.shape[1], num_categories)
    return fused_forward(x.astype(jnp.bfloat16), layer_params, sel, bias,
                         num_categories)


def reference_forward(x, params, num_categories):
    """Pure-JAX f32 port of the original PyTorch forward (16-gate table)."""
    for p in params:
        conn = jax.nn.softmax(p["c"], axis=0)
        a = x @ conn[:, :, 0]
        b = x @ conn[:, :, 1]
        ab = a * b
        one = jnp.ones_like(a)
        g2 = a - ab
        g4 = b - ab
        g7 = a + b - ab
        g6 = g7 - ab
        gates = jnp.stack(
            [jnp.zeros_like(a), ab, g2, a, g4, b, g6, g7,
             one - g7, one - g6, one - b, one - g4,
             one - a, one - g2, one - ab, one], axis=0)          # (16, B, g)
        w = jax.nn.softmax(p["w"], axis=0)                        # (16, g)
        x = jnp.einsum("kg,kbg->bg", w, gates)
    bsz, g_last = x.shape
    opc = g_last // num_categories
    logits = x.reshape(bsz, num_categories, opc).sum(-1)
    return jax.nn.softmax(logits, axis=-1)


# ---------------------------------------------------------------------------
if __name__ == "__main__":
    batch = 256                       # >=128 per block, 2 blocks -> both v7x TCs busy
    input_size = 64
    net_architecture = [128, 64, 16]  # last layer = 4 categories * 4 outputs
    num_categories = 4

    key = jax.random.PRNGKey(0)
    key, kx = jax.random.split(key)
    x = jax.random.uniform(kx, (batch, input_size), dtype=jnp.float32)
    params = init_params(key, net_architecture, input_size)

    out = jax.block_until_ready(model_forward(x, params, num_categories))

    assert out.shape == (batch, num_categories)
    # final softmax uses exact division -> rows sum to 1 tightly
    assert bool(jnp.allclose(jnp.sum(out, axis=-1), 1.0, atol=1e-4))

    # Validate vs. the original f32 16-gate math (tolerance covers the bf16
    # MXU inputs; all softmax normalisation is now exact).
    ref = reference_forward(x, params, num_categories)
    max_err = float(jnp.max(jnp.abs(out - ref)))
    assert max_err < 3e-2, f"mismatch vs reference: {max_err}"

    print("KERNEL_OK")
</pallas_src>

<mosaic_0001>
module attributes {stable_mosaic.version = 11 : i64} {
  func.func @kernel(%arg0: i32, %arg1: memref<128x64xbf16, #tpu.memory_space<vmem>>, %arg2: memref<64x256xbf16, #tpu.memory_space<vmem>>, %arg3: memref<4x128xf32, #tpu.memory_space<vmem>>, %arg4: memref<128x256xbf16, #tpu.memory_space<vmem>>, %arg5: memref<4x128xf32, #tpu.memory_space<vmem>>, %arg6: memref<128x256xbf16, #tpu.memory_space<vmem>>, %arg7: memref<4x128xf32, #tpu.memory_space<vmem>>, %arg8: memref<128x128xbf16, #tpu.memory_space<vmem>>, %arg9: memref<1x128xf32, #tpu.memory_space<vmem>>, %arg10: memref<128x128xf32, #tpu.memory_space<vmem>>) attributes {dimension_semantics = [#tpu.dimension_semantics<parallel>], iteration_bounds = array<i64: 2>, scalar_prefetch = 0 : i64, scratch_operands = 0 : i64, tpu.core_type = #tpu.core_type<tc>, window_params = [{transform_indices = @transform_0, window_bounds = array<i64: 128, 64>}, {pipeline_mode = #tpu.pipeline_mode<synchronous>, transform_indices = @transform_1, window_bounds = array<i64: 64, 256>}, {pipeline_mode = #tpu.pipeline_mode<synchronous>, transform_indices = @transform_2, window_bounds = array<i64: 4, 128>}, {pipeline_mode = #tpu.pipeline_mode<synchronous>, transform_indices = @transform_3, window_bounds = array<i64: 128, 256>}, {pipeline_mode = #tpu.pipeline_mode<synchronous>, transform_indices = @transform_4, window_bounds = array<i64: 4, 128>}, {pipeline_mode = #tpu.pipeline_mode<synchronous>, transform_indices = @transform_5, window_bounds = array<i64: 128, 256>}, {pipeline_mode = #tpu.pipeline_mode<synchronous>, transform_indices = @transform_6, window_bounds = array<i64: 4, 128>}, {pipeline_mode = #tpu.pipeline_mode<synchronous>, transform_indices = @transform_7, window_bounds = array<i64: 128, 128>}, {pipeline_mode = #tpu.pipeline_mode<synchronous>, transform_indices = @transform_8, window_bounds = array<i64: 1, 128>}, {transform_indices = @transform_9, window_bounds = array<i64: 128, 128>}]} {
    %c0 = arith.constant 0 : index
    %c0_0 = arith.constant 0 : index
    %0 = vector.load %arg1[%c0, %c0_0] : memref<128x64xbf16, #tpu.memory_space<vmem>>, vector<128x64xbf16>
    %c0_1 = arith.constant 0 : index
    %c0_2 = arith.constant 0 : index
    %1 = vector.load %arg2[%c0_1, %c0_2] : memref<64x256xbf16, #tpu.memory_space<vmem>>, vector<64x256xbf16>
    %c0_3 = arith.constant 0 : index
    %c0_4 = arith.constant 0 : index
    %2 = vector.load %arg3[%c0_3, %c0_4] : memref<4x128xf32, #tpu.memory_space<vmem>>, vector<4x128xf32>
    %cst = arith.constant dense<0.000000e+00> : vector<128x256xf32>
    %3 = tpu.matmul %0, %1, %cst {dimension_numbers = #tpu.dot_dimension_numbers<[1], [0], [0], [1], [0, 0, 1, 1], [], []>} : vector<128x64xbf16>, vector<64x256xbf16>, vector<128x256xf32> -> vector<128x256xf32>
    %4 = vector.extract_strided_slice %3 {offsets = [0, 0], sizes = [128, 128], strides = [1, 1]} : vector<128x256xf32> to vector<128x128xf32>
    %5 = vector.extract_strided_slice %3 {offsets = [0, 128], sizes = [128, 128], strides = [1, 1]} : vector<128x256xf32> to vector<128x128xf32>
    %6 = vector.extract_strided_slice %2 {offsets = [0, 0], sizes = [1, 128], strides = [1, 1]} : vector<4x128xf32> to vector<1x128xf32>
    %7 = vector.extract_strided_slice %2 {offsets = [1, 0], sizes = [1, 128], strides = [1, 1]} : vector<4x128xf32> to vector<1x128xf32>
    %8 = vector.broadcast %7 : vector<1x128xf32> to vector<128x128xf32>
    %9 = arith.mulf %8, %4 : vector<128x128xf32>
    %10 = vector.broadcast %6 : vector<1x128xf32> to vector<128x128xf32>
    %11 = arith.addf %10, %9 : vector<128x128xf32>
    %12 = vector.extract_strided_slice %2 {offsets = [2, 0], sizes = [1, 128], strides = [1, 1]} : vector<4x128xf32> to vector<1x128xf32>
    %13 = vector.broadcast %12 : vector<1x128xf32> to vector<128x128xf32>
    %14 = arith.mulf %13, %5 : vector<128x128xf32>
    %15 = arith.addf %11, %14 : vector<128x128xf32>
    %16 = vector.extract_strided_slice %2 {offsets = [3, 0], sizes = [1, 128], strides = [1, 1]} : vector<4x128xf32> to vector<1x128xf32>
    %17 = arith.mulf %4, %5 : vector<128x128xf32>
    %18 = vector.broadcast %16 : vector<1x128xf32> to vector<128x128xf32>
    %19 = arith.mulf %18, %17 : vector<128x128xf32>
    %20 = arith.addf %15, %19 : vector<128x128xf32>
    %c0_5 = arith.constant 0 : index
    %c0_6 = arith.constant 0 : index
    %21 = vector.load %arg4[%c0_5, %c0_6] : memref<128x256xbf16, #tpu.memory_space<vmem>>, vector<128x256xbf16>
    %c0_7 = arith.constant 0 : index
    %c0_8 = arith.constant 0 : index
    %22 = vector.load %arg5[%c0_7, %c0_8] : memref<4x128xf32, #tpu.memory_space<vmem>>, vector<4x128xf32>
    %23 = arith.truncf %20 : vector<128x128xf32> to vector<128x128xbf16>
    %cst_9 = arith.constant dense<0.000000e+00> : vector<128x256xf32>
    %24 = tpu.matmul %23, %21, %cst_9 {dimension_numbers = #tpu.dot_dimension_numbers<[1], [0], [0], [1], [0, 0, 1, 1], [], []>} : vector<128x128xbf16>, vector<128x256xbf16>, vector<128x256xf32> -> vector<128x256xf32>
    %25 = vector.extract_strided_slice %24 {offsets = [0, 0], sizes = [128, 128], strides = [1, 1]} : vector<128x256xf32> to vector<128x128xf32>
    %26 = vector.extract_strided_slice %24 {offsets = [0, 128], sizes = [128, 128], strides = [1, 1]} : vector<128x256xf32> to vector<128x128xf32>
    %27 = vector.extract_strided_slice %22 {offsets = [0, 0], sizes = [1, 128], strides = [1, 1]} : vector<4x128xf32> to vector<1x128xf32>
    %28 = vector.extract_strided_slice %22 {offsets = [1, 0], sizes = [1, 128], strides = [1, 1]} : vector<4x128xf32> to vector<1x128xf32>
    %29 = vector.broadcast %28 : vector<1x128xf32> to vector<128x128xf32>
    %30 = arith.mulf %29, %25 : vector<128x128xf32>
    %31 = vector.broadcast %27 : vector<1x128xf32> to vector<128x128xf32>
    %32 = arith.addf %31, %30 : vector<128x128xf32>
    %33 = vector.extract_strided_slice %22 {offsets = [2, 0], sizes = [1, 128], strides = [1, 1]} : vector<4x128xf32> to vector<1x128xf32>
    %34 = vector.broadcast %33 : vector<1x128xf32> to vector<128x128xf32>
    %35 = arith.mulf %34, %26 : vector<128x128xf32>
    %36 = arith.addf %32, %35 : vector<128x128xf32>
    %37 = vector.extract_strided_slice %22 {offsets = [3, 0], sizes = [1, 128], strides = [1, 1]} : vector<4x128xf32> to vector<1x128xf32>
    %38 = arith.mulf %25, %26 : vector<128x128xf32>
    %39 = vector.broadcast %37 : vector<1x128xf32> to vector<128x128xf32>
    %40 = arith.mulf %39, %38 : vector<128x128xf32>
    %41 = arith.addf %36, %40 : vector<128x128xf32>
    %c0_10 = arith.constant 0 : index
    %c0_11 = arith.constant 0 : index
    %42 = vector.load %arg6[%c0_10, %c0_11] : memref<128x256xbf16, #tpu.memory_space<vmem>>, vector<128x256xbf16>
    %c0_12 = arith.constant 0 : index
    %c0_13 = arith.constant 0 : index
    %43 = vector.load %arg7[%c0_12, %c0_13] : memref<4x128xf32, #tpu.memory_space<vmem>>, vector<4x128xf32>
    %44 = arith.truncf %41 : vector<128x128xf32> to vector<128x128xbf16>
    %cst_14 = arith.constant dense<0.000000e+00> : vector<128x256xf32>
    %45 = tpu.matmul %44, %42, %cst_14 {dimension_numbers = #tpu.dot_dimension_numbers<[1], [0], [0], [1], [0, 0, 1, 1], [], []>} : vector<128x128xbf16>, vector<128x256xbf16>, vector<128x256xf32> -> vector<128x256xf32>
    %46 = vector.extract_strided_slice %45 {offsets = [0, 0], sizes = [128, 128], strides = [1, 1]} : vector<128x256xf32> to vector<128x128xf32>
    %47 = vector.extract_strided_slice %45 {offsets = [0, 128], sizes = [128, 128], strides = [1, 1]} : vector<128x256xf32> to vector<128x128xf32>
    %48 = vector.extract_strided_slice %43 {offsets = [0, 0], sizes = [1, 128], strides = [1, 1]} : vector<4x128xf32> to vector<1x128xf32>
    %49 = vector.extract_strided_slice %43 {offsets = [1, 0], sizes = [1, 128], strides = [1, 1]} : vector<4x128xf32> to vector<1x128xf32>
    %50 = vector.broadcast %49 : vector<1x128xf32> to vector<128x128xf32>
    %51 = arith.mulf %50, %46 : vector<128x128xf32>
    %52 = vector.broadcast %48 : vector<1x128xf32> to vector<128x128xf32>
    %53 = arith.addf %52, %51 : vector<128x128xf32>
    %54 = vector.extract_strided_slice %43 {offsets = [2, 0], sizes = [1, 128], strides = [1, 1]} : vector<4x128xf32> to vector<1x128xf32>
    %55 = vector.broadcast %54 : vector<1x128xf32> to vector<128x128xf32>
    %56 = arith.mulf %55, %47 : vector<128x128xf32>
    %57 = arith.addf %53, %56 : vector<128x128xf32>
    %58 = vector.extract_strided_slice %43 {offsets = [3, 0], sizes = [1, 128], strides = [1, 1]} : vector<4x128xf32> to vector<1x128xf32>
    %59 = arith.mulf %46, %47 : vector<128x128xf32>
    %60 = vector.broadcast %58 : vector<1x128xf32> to vector<128x128xf32>
    %61 = arith.mulf %60, %59 : vector<128x128xf32>
    %62 = arith.addf %57, %61 : vector<128x128xf32>
    %63 = arith.truncf %62 : vector<128x128xf32> to vector<128x128xbf16>
    %c0_15 = arith.constant 0 : index
    %c0_16 = arith.constant 0 : index
    %64 = vector.load %arg8[%c0_15, %c0_16] : memref<128x128xbf16, #tpu.memory_space<vmem>>, vector<128x128xbf16>
    %cst_17 = arith.constant dense<0.000000e+00> : vector<128x128xf32>
    %65 = tpu.matmul %63, %64, %cst_17 {dimension_numbers = #tpu.dot_dimension_numbers<[1], [0], [0], [1], [0, 0, 1, 1], [], []>} : vector<128x128xbf16>, vector<128x128xbf16>, vector<128x128xf32> -> vector<128x128xf32>
    %c0_18 = arith.constant 0 : index
    %c0_19 = arith.constant 0 : index
    %66 = vector.load %arg9[%c0_18, %c0_19] : memref<1x128xf32, #tpu.memory_space<vmem>>, vector<1x128xf32>
    %67 = vector.broadcast %66 : vector<1x128xf32> to vector<128x128xf32>
    %68 = arith.addf %65, %67 : vector<128x128xf32>
    %cst_20 = arith.constant dense<0xFF800000> : vector<128xf32>
    %69 = vector.multi_reduction <maximumf>, %68, %cst_20 [1] : vector<128x128xf32> to vector<128xf32>
    %70 = vector.shape_cast %69 : vector<128xf32> to vector<128x1xf32>
    %71 = vector.broadcast %70 : vector<128x1xf32> to vector<128x128xf32>
    %72 = arith.subf %68, %71 : vector<128x128xf32>
    %73 = math.exp %72 : vector<128x128xf32>
    %cst_21 = arith.constant dense<0.000000e+00> : vector<128xf32>
    %74 = vector.multi_reduction <add>, %73, %cst_21 [1] : vector<128x128xf32> to vector<128xf32>
    %75 = vector.shape_cast %74 : vector<128xf32> to vector<128x1xf32>
    %76 = vector.broadcast %75 : vector<128x1xf32> to vector<128x128xf32>
    %77 = arith.divf %73, %76 : vector<128x128xf32>
    %c0_22 = arith.constant 0 : index
    %c0_23 = arith.constant 0 : index
    %78 = vector.load %arg10[%c0_22, %c0_23] : memref<128x128xf32, #tpu.memory_space<vmem>>, vector<128x128xf32>
    tpu.vector_store %arg10[%c0_22, %c0_23], %77 {strides = array<i32>} : memref<128x128xf32, #tpu.memory_space<vmem>>, vector<128x128xf32>,
    return
  }
  func.func @transform_0(%arg0: i32) -> (i32, i32) {
    %c0_i32 = arith.constant 0 : i32
    %c0_i32_0 = arith.constant 0 : i32
    return %arg0, %c0_i32 : i32, i32
  }
  func.func @transform_1(%arg0: i32) -> (i32, i32) {
    %c0_i32 = arith.constant 0 : i32
    %c0_i32_0 = arith.constant 0 : i32
    %c0_i32_1 = arith.constant 0 : i32
    return %c0_i32, %c0_i32_0 : i32, i32
  }
  func.func @transform_2(%arg0: i32) -> (i32, i32) {
    %c0_i32 = arith.constant 0 : i32
    %c0_i32_0 = arith.constant 0 : i32
    %c0_i32_1 = arith.constant 0 : i32
    return %c0_i32, %c0_i32_0 : i32, i32
  }
  func.func @transform_3(%arg0: i32) -> (i32, i32) {
    %c0_i32 = arith.constant 0 : i32
    %c0_i32_0 = arith.constant 0 : i32
    %c0_i32_1 = arith.constant 0 : i32
    return %c0_i32, %c0_i32_0 : i32, i32
  }
  func.func @transform_4(%arg0: i32) -> (i32, i32) {
    %c0_i32 = arith.constant 0 : i32
    %c0_i32_0 = arith.constant 0 : i32
    %c0_i32_1 = arith.constant 0 : i32
    return %c0_i32, %c0_i32_0 : i32, i32
  }
  func.func @transform_5(%arg0: i32) -> (i32, i32) {
    %c0_i32 = arith.constant 0 : i32
    %c0_i32_0 = arith.constant 0 : i32
    %c0_i32_1 = arith.constant 0 : i32
    return %c0_i32, %c0_i32_0 : i32, i32
  }
  func.func @transform_6(%arg0: i32) -> (i32, i32) {
    %c0_i32 = arith.constant 0 : i32
    %c0_i32_0 = arith.constant 0 : i32
    %c0_i32_1 = arith.constant 0 : i32
    return %c0_i32, %c0_i32_0 : i32, i32
  }
  func.func @transform_7(%arg0: i32) -> (i32, i32) {
    %c0_i32 = arith.constant 0 : i32
    %c0_i32_0 = arith.constant 0 : i32
    %c0_i32_1 = arith.constant 0 : i32
    return %c0_i32, %c0_i32_0 : i32, i32
  }
  func.func @transform_8(%arg0: i32) -> (i32, i32) {
    %c0_i32 = arith.constant 0 : i32
    %c0_i32_0 = arith.constant 0 : i32
    %c0_i32_1 = arith.constant 0 : i32
    return %c0_i32, %c0_i32_0 : i32, i32
  }
  func.func @transform_9(%arg0: i32) -> (i32, i32) {
    %c0_i32 = arith.constant 0 : i32
    %c0_i32_0 = arith.constant 0 : i32
    return %arg0, %c0_i32 : i32, i32
  }
}

</mosaic_0001>

<bundles_post_ra>
// kernel: model_forward.1
= control target key start
LH: loop header
LB: loop body
LE: loop exit
PB: predicated region body
PF: predicated region fallthrough
CT: control target
= control target key end

     0   :  { %s2124_s30 = smov 0   ;;  %s2697_s0 = inlined_call_operand.vmem [shape: bf16[256,64], index: 0, kind: input, shape index: {}]   ;;  %s2698_s1 = inlined_call_operand.vmem [shape: bf16[64,256], index: 1, kind: input, shape index: {}]   ;;  %s2699_s2 = inlined_call_operand.vmem [shape: f32[4,128], index: 2, kind: input, shape index: {}]   ;;  %s2700_s3 = inlined_call_operand.vmem [shape: bf16[128,256], index: 3, kind: input, shape index: {}]   ;;  %s2701_s4 = inlined_call_operand.vmem [shape: f32[4,128], index: 4, kind: input, shape index: {}]   ;;  %s2702_s5 = inlined_call_operand.vmem [shape: bf16[128,256], index: 5, kind: input, shape index: {}]   ;;  %s2703_s6 = inlined_call_operand.vmem [shape: f32[4,128], index: 6, kind: input, shape index: {}]   ;;  %s2704_s7 = inlined_call_operand.vmem [shape: bf16[128,128], index: 7, kind: input, shape index: {}]   ;;  %s2705_s8 = inlined_call_operand.vmem [shape: f32[1,128], index: 8, kind: input, shape index: {}]   ;;  %s2706_s9 = inlined_call_operand.vmem [shape: f32[256,128], index: 9, kind: output, shape index: {}]  }
   0x1 LB: > { %s1792_s10 = sadd.s32 4294967295, %s2071_s30   ;;  %p1796_p0 = scmp.ge.s32.totalorder %s2071_s30, 1  ;;  %s2071_s30 = sphi %s2124_s30, %s19_s30  }
   0x2   : > { %p288_p1 = scmp.lt.s32.totalorder %s2071_s30, 3 }
   0x4   : > { %p289_p2 = pnand %p1796_p0, %p288_p1 }
   0x5   : > { %s1797_s13 = sshll.u32 (!%p289_p2), %s1792_s10, 4 }
   0x6   : > { %292 = sbr.rel (%p289_p2) target bundleno = 1222 (0x4c6), region = 56  ;;  %p325_p3 = scmp.lt.s32.totalorder (!%p289_p2), %s1797_s13, 31 }
   0xb   : > { %v1925_v0 = vld [vmem:[%s2698_s1 + $0x34] ss:$8 sps:$4 sm:$0xff]   ;;  %v1927_v1 = vld [vmem:[%s2698_s1 + $0x30] ss:$8 sps:$4 sm:$0xff]   ;;  %v2073_v2 = vmov 0   ;;  %s2708_s13 = smov (!%p325_p3, %s1797_s13), 31  ;;  %v580_v47 = vlaneseq }
   0xc   : > { %499 = vmatprep.mubr.bf16.mxu0 %v2073_v2  ;;  %845 = vmatprep.mubr.bf16.mxu1 %v2073_v2  ;;  %v1928_v3 = vld [vmem:[%s2698_s1 + $0x24] ss:$8 sps:$4 sm:$0xff]   ;;  %v1930_v4 = vld [vmem:[%s2698_s1 + $0x20] ss:$8 sps:$4 sm:$0xff]   ;;  %v1931_v5 = vld [vmem:[%s2698_s1 + $0x14] ss:$8 sps:$4 sm:$0xff]  }
   0xd   : > { %475 = vmatprep.subr.bf16.mxu0 %v1925_v0  ;;  %s1798_s22 = sshll.u32 %s2708_s13, 2  ;;  %v1945_v6 = vld [vmem:[%s2700_s3 + $0x74] ss:$8 sps:$4 sm:$0xff]   ;;  %v1947_v7 = vld [vmem:[%s2700_s3 + $0x70] ss:$8 sps:$4 sm:$0xff]   ;;  %vm442_vm0 = vcmask 523264  }
   0xe   : > { %476 = vmatpush1.bf16.msra.mxu0 %v1927_v1  ;;  %s2155_s25 = scalar_lea.vmem %s2697_s0, %s1798_s22  ;;  %v1933_v8 = vld [vmem:[%s2698_s1 + $0x10] ss:$8 sps:$4 sm:$0xff]   ;;  %v1934_v9 = vld [vmem:[%s2698_s1 + $0x4] ss:$8 sps:$4 sm:$0xff]   ;;  %813 = vmatprep.subr.bf16.mxu1 %v1945_v6  ;;  %v1936_v10 = vld [vmem:[%s2698_s1] ss:$8 sps:$4 sm:$0xff]  }
   0xf   : > { %477 = vmatprep.subr.bf16.mxu0 %v1928_v3  ;;  %814 = vmatpush1.bf16.msra.mxu1 %v1947_v7  ;;  %v1937_v11 = vld [vmem:[%s2155_s25] sm:$0xff]   ;;  %v1951_v14 = vld [vmem:[%s2700_s3 + $0x54] ss:$8 sps:$4 sm:$0xff]   ;;  %v1953_v15 = vld [vmem:[%s2700_s3 + $0x50] ss:$8 sps:$4 sm:$0xff]   ;;  %v581_v48 = vshrl.u32 %v580_v47, 7 }
  0x10   : > { %v1948_v12 = vld [vmem:[%s2700_s3 + $0x64] ss:$8 sps:$4 sm:$0xff]   ;;  %v1950_v13 = vld [vmem:[%s2700_s3 + $0x60] ss:$8 sps:$4 sm:$0xff]   ;;  %v1957_v19 = vld [vmem:[%s2700_s3 + $0x34] ss:$8 sps:$4 sm:$0xff]  }
  0x11   : > { %815 = vmatprep.subr.bf16.mxu1 %v1948_v12  ;;  %v1954_v16 = vld [vmem:[%s2700_s3 + $0x44] ss:$8 sps:$4 sm:$0xff]   ;;  %v1956_v18 = vld [vmem:[%s2700_s3 + $0x40] ss:$8 sps:$4 sm:$0xff]   ;;  %v1939_v20 = vld [vmem:[%s2155_s25 + $0x10] sm:$0xff]   ;;  %v2280_v49 = vsub.s32 1, %v581_v48 }
  0x12   : > { %478 = vmatpush1.bf16.msra.mxu0 %v1930_v4  ;;  %v1938_v17 = vld [vmem:[%s2155_s25 + $0x8] sm:$0xff]   ;;  %v1940_v21 = vld [vmem:[%s2155_s25 + $0x18] sm:$0xff]   ;;  %v1941_v22 = vld [vmem:[%s2155_s25 + $0x20] sm:$0xff]   ;;  %v2285_v51 = vsub.s32 0, %v581_v48  ;;  %v2287_v52 = vsub.s32 2, %v581_v48  ;;  %v2292_v54 = vsub.s32 3, %v581_v48 }
  0x13   : > { %479 = vmatprep.subr.bf16.mxu0 %v1931_v5  ;;  %816 = vmatpush1.bf16.msra.mxu1 %v1950_v13  ;;  %v1942_v23 = vld [vmem:[%s2155_s25 + $0x28] sm:$0xff]   ;;  %v1943_v24 = vld [vmem:[%s2155_s25 + $0x30] sm:$0xff]   ;;  %v1944_v25 = vld [vmem:[%s2155_s25 + $0x38] sm:$0xff]   ;;  %s1800_s26 = sshll.u32 %s2708_s13, 3 }
  0x14   : > { %817 = vmatprep.subr.bf16.mxu1 %v1951_v14  ;;  %v1959_v26 = vld [vmem:[%s2700_s3 + $0x30] ss:$8 sps:$4 sm:$0xff]   ;;  %v1960_v27 = vld [vmem:[%s2700_s3 + $0x24] ss:$8 sps:$4 sm:$0xff]   ;;  %v1962_v28 = vld [vmem:[%s2700_s3 + $0x20] ss:$8 sps:$4 sm:$0xff]   ;;  %s2660_s29 = scalar_lea.vmem %s2706_s9, %s1800_s26 }
  0x15   : > { %v1963_v29 = vld [vmem:[%s2700_s3 + $0x14] ss:$8 sps:$4 sm:$0xff]   ;;  %v1965_v30 = vld [vmem:[%s2700_s3 + $0x10] ss:$8 sps:$4 sm:$0xff]   ;;  %v1966_v31 = vld [vmem:[%s2700_s3 + $0x4] ss:$8 sps:$4 sm:$0xff]  }
  0x16   : > { %480 = vmatpush1.bf16.msra.mxu0 %v1933_v8  ;;  %v1968_v32 = vld [vmem:[%s2700_s3] ss:$8 sps:$4 sm:$0xff]   ;;  %v1969_v33 = vld [vmem:[%s2702_s5 + $0x70] ss:$8 sps:$4 sm:$0xff]   ;;  %v1971_v34 = vld [vmem:[%s2702_s5 + $0x74] ss:$8 sps:$4 sm:$0xff]  }
  0x17   : > { %481 = vmatprep.subr.bf16.mxu0 %v1934_v9  ;;  %818 = vmatpush1.bf16.msra.mxu1 %v1953_v15  ;;  %v1974_v35 = vld [vmem:[%s2702_s5 + $0x64] ss:$8 sps:$4 sm:$0xff]   ;;  %v1972_v36 = vld [vmem:[%s2702_s5 + $0x60] ss:$8 sps:$4 sm:$0xff]   ;;  %v1977_v37 = vld [vmem:[%s2702_s5 + $0x54] ss:$8 sps:$4 sm:$0xff]  }
  0x18   : > { %819 = vmatprep.subr.bf16.mxu1 %v1954_v16  ;;  %v1975_v38 = vld [vmem:[%s2702_s5 + $0x50] ss:$8 sps:$4 sm:$0xff]   ;;  %v1980_v39 = vld [vmem:[%s2702_s5 + $0x44] ss:$8 sps:$4 sm:$0xff]   ;;  %v1978_v40 = vld [vmem:[%s2702_s5 + $0x40] ss:$8 sps:$4 sm:$0xff]  }
  0x19   : > { %v1983_v41 = vld [vmem:[%s2702_s5 + $0x34] ss:$8 sps:$4 sm:$0xff]   ;;  %v1981_v42 = vld [vmem:[%s2702_s5 + $0x30] ss:$8 sps:$4 sm:$0xff]   ;;  %v1986_v43 = vld [vmem:[%s2702_s5 + $0x24] ss:$8 sps:$4 sm:$0xff]  }
  0x1a   : > { %482 = vmatpush1.bf16.msra.mxu0 %v1936_v10  ;;  %v1984_v44 = vld [vmem:[%s2702_s5 + $0x20] ss:$8 sps:$4 sm:$0xff]   ;;  %v1989_v45 = vld [vmem:[%s2702_s5 + $0x14] ss:$8 sps:$4 sm:$0xff]   ;;  %v1987_v46 = vld [vmem:[%s2702_s5 + $0x10] ss:$8 sps:$4 sm:$0xff]  }
  0x1b   : > { %820 = vmatpush1.bf16.msra.mxu1 %v1956_v18  ;;  %1159 = vmatprep.subr.bf16.mxu0 %v1971_v34  ;;  %v361_v50 = vld [vmem:[%s2699_s2] sm:$0xf] }
  0x1c   : > { %821 = vmatprep.subr.bf16.mxu1 %v1957_v19  ;;  %v2290_v53 = vrot.slane %v361_v50, %v2280_v49  ;;  %v2295_v55 = vrot.slane %v361_v50, %v2285_v51  ;;  %v2298_v56 = vrot.slane %v361_v50, %v2287_v52  ;;  %v2302_v60 = vrot.slane %v361_v50, %v2292_v54 }
  0x1d   : > { %1817 = vmatmul.mubr.msk.bf16.vlgmr.msra.gmra.mxu0 %vm442_vm0, %v1937_v11 }
  0x1e   : > { %509 = vmatprep.mubr.bf16.mxu0 %v2073_v2  ;;  %1160 = vmatpush1.bf16.msra.mxu0 %v1969_v33 }
  0x1f   : > { %822 = vmatpush1.bf16.msra.mxu1 %v1959_v26  ;;  %1161 = vmatprep.subr.bf16.mxu0 %v1974_v35 }
  0x20   : > { %823 = vmatprep.subr.bf16.mxu1 %v1960_v27 }
  0x22   : > { %1162 = vmatpush1.bf16.msra.mxu0 %v1972_v36 }
  0x23   : > { %824 = vmatpush1.bf16.msra.mxu1 %v1962_v28  ;;  %1163 = vmatprep.subr.bf16.mxu0 %v1977_v37 }
  0x24   : > { %825 = vmatprep.subr.bf16.mxu1 %v1963_v29 }
  0x25   : > { %1818 = vmatmul.mubr.msk.bf16.gmra.mxu0 %vm442_vm0, %v1938_v17 }
  0x26   : > { %519 = vmatprep.mubr.bf16.mxu0 %v2073_v2  ;;  %1164 = vmatpush1.bf16.msra.mxu0 %v1975_v38 }
  0x27   : > { %826 = vmatpush1.bf16.msra.mxu1 %v1965_v30  ;;  %1165 = vmatprep.subr.bf16.mxu0 %v1980_v39 }
  0x28   : > { %827 = vmatprep.subr.bf16.mxu1 %v1966_v31 }
  0x2a   : > { %1166 = vmatpush1.bf16.msra.mxu0 %v1978_v40 }
  0x2b   : > { %828 = vmatpush1.bf16.msra.mxu1 %v1968_v32  ;;  %1167 = vmatprep.subr.bf16.mxu0 %v1983_v41 }
  0x2d   : > { %1819 = vmatmul.mubr.msk.bf16.gmra.mxu0 %vm442_vm0, %v1939_v20 }
  0x2e   : > { %529 = vmatprep.mubr.bf16.mxu0 %v2073_v2  ;;  %1168 = vmatpush1.bf16.msra.mxu0 %v1981_v42 }
  0x2f   : > { %1169 = vmatprep.subr.bf16.mxu0 %v1986_v43 }
  0x32   : > { %1170 = vmatpush1.bf16.msra.mxu0 %v1984_v44 }
  0x33   : > { %1171 = vmatprep.subr.bf16.mxu0 %v1989_v45 }
  0x35   : > { %1820 = vmatmul.mubr.msk.bf16.gmra.mxu0 %vm442_vm0, %v1940_v21 }
  0x36   : > { %539 = vmatprep.mubr.bf16.mxu0 %v2073_v2  ;;  %1172 = vmatpush1.bf16.msra.mxu0 %v1987_v46 }
  0x3d   : > { %1821 = vmatmul.mubr.msk.bf16.gmra.mxu0 %vm442_vm0, %v1941_v22 }
  0x3e   : > { %549 = vmatprep.mubr.bf16.mxu0 %v2073_v2 }
  0x45   : > { %1822 = vmatmul.mubr.msk.bf16.gmra.mxu0 %vm442_vm0, %v1942_v23 }
  0x46   : > { %559 = vmatprep.mubr.bf16.mxu0 %v2073_v2 }
  0x4d   : > { %1823 = vmatmul.mubr.msk.bf16.gmra.mxu0 %vm442_vm0, %v1943_v24 }
  0x4e   : > { %569 = vmatprep.mubr.bf16.mxu0 %v2073_v2 }
  0x55   : > { %1824 = vmatmul.mubr.msk.bf16.gmra.mxu0 %vm442_vm0, %v1944_v25 }
  0x56   : > { %1191 = vmatprep.mubr.bf16.mxu0 %v2073_v2 }
  0xdd   : > { %v501_v57 = vpop.f32.mrf.mxu0 }
  0xde   : > { %v584_v58 = vmul.f32 %v2290_v53, %v501_v57 }
  0xdf   : > { %v503_v59 = vpop.f32.mrf.mxu0 }
  0xe0   : > { %v604_v61 = vadd.f32 %v2295_v55, %v584_v58  ;;  %v624_v62 = vmul.f32 %v2298_v56, %v503_v59  ;;  %v656_v63 = vmul.f32 %v503_v59, %v501_v57 }
  0xe1   : > { %v505_v0 = vpop.f32.mrf.mxu0 }
  0xe2   : > { %v585_v1 = vmul.f32 %v2290_v53, %v505_v0  ;;  %v640_v3 = vadd.f32 %v624_v62, %v604_v61  ;;  %v676_v4 = vmul.f32 %v2302_v60, %v656_v63 }
  0xe3   : > { %v507_v5 = vpop.f32.mrf.mxu0 }
  0xe4   : > { %v605_v6 = vadd.f32 %v2295_v55, %v585_v1  ;;  %v625_v7 = vmul.f32 %v2298_v56, %v507_v5  ;;  %v657_v8 = vmul.f32 %v507_v5, %v505_v0  ;;  %v692_v13 = vadd.f32 %v676_v4, %v640_v3 }
  0xe5   : > { %v511_v9 = vpop.f32.mrf.mxu0 }
  0xe6   : > { %v641_v10 = vadd.f32 %v625_v7, %v605_v6  ;;  %v677_v11 = vmul.f32 %v2302_v60, %v657_v8  ;;  %v586_v12 = vmul.f32 %v2290_v53, %v511_v9 }
  0xe7   : > { %v513_v14 = vpop.f32.mrf.mxu0 }
  0xe8   : > { %v693_v15 = vadd.f32 %v677_v11, %v641_v10  ;;  %v606_v16 = vadd.f32 %v2295_v55, %v586_v12  ;;  %v626_v17 = vmul.f32 %v2298_v56, %v513_v14  ;;  %v658_v18 = vmul.f32 %v513_v14, %v511_v9 }
  0xe9   : > { %v515_v19 = vpop.f32.mrf.mxu0 }
  0xea   : > { %v587_v20 = vmul.f32 %v2290_v53, %v515_v19  ;;  %v725_v21 = vpack.c.bf16 %v693_v15, %v692_v13  ;;  %v642_v22 = vadd.f32 %v626_v17, %v606_v16  ;;  %v678_v23 = vmul.f32 %v2302_v60, %v658_v18 }
  0xeb   : > { %v517_v24 = vpop.f32.mrf.mxu0 }
  0xec   : > { %v607_v25 = vadd.f32 %v2295_v55, %v587_v20  ;;  %v627_v26 = vmul.f32 %v2298_v56, %v517_v24  ;;  %v659_v27 = vmul.f32 %v517_v24, %v515_v19  ;;  %846 = vmatmul.mubr.bf16.vlgmr.msra.gmra.mxu1 %v725_v21  ;;  %v694_v32 = vadd.f32 %v678_v23, %v642_v22 }
  0xed   : > { %v521_v28 = vpop.f32.mrf.mxu0  ;;  %855 = vmatprep.mubr.bf16.mxu1 %v2073_v2 }
  0xee   : > { %v643_v29 = vadd.f32 %v627_v26, %v607_v25  ;;  %v679_v30 = vmul.f32 %v2302_v60, %v659_v27  ;;  %v588_v31 = vmul.f32 %v2290_v53, %v521_v28 }
  0xef   : > { %v523_v33 = vpop.f32.mrf.mxu0 }
  0xf0   : > { %v695_v34 = vadd.f32 %v679_v30, %v643_v29  ;;  %v608_v35 = vadd.f32 %v2295_v55, %v588_v31  ;;  %v628_v36 = vmul.f32 %v2298_v56, %v523_v33  ;;  %v660_v37 = vmul.f32 %v523_v33, %v521_v28 }
  0xf1   : > { %v525_v38 = vpop.f32.mrf.mxu0 }
  0xf2   : > { %v589_v39 = vmul.f32 %v2290_v53, %v525_v38  ;;  %v726_v40 = vpack.c.bf16 %v695_v34, %v694_v32  ;;  %v644_v41 = vadd.f32 %v628_v36, %v608_v35  ;;  %v680_v42 = vmul.f32 %v2302_v60, %v660_v37 }
  0xf3   : > { %v527_v43 = vpop.f32.mrf.mxu0 }
  0xf4   : > { %v609_v44 = vadd.f32 %v2295_v55, %v589_v39  ;;  %v629_v45 = vmul.f32 %v2298_v56, %v527_v43  ;;  %v661_v46 = vmul.f32 %v527_v43, %v525_v38  ;;  %856 = vmatmul.mubr.bf16.gmra.mxu1 %v726_v40  ;;  %v696_v58 = vadd.f32 %v680_v42, %v644_v41 }
  0xf5   : > { %v531_v47 = vpop.f32.mrf.mxu0  ;;  %865 = vmatprep.mubr.bf16.mxu1 %v2073_v2 }
  0xf6   : > { %v645_v48 = vadd.f32 %v629_v45, %v609_v44  ;;  %v681_v50 = vmul.f32 %v2302_v60, %v661_v46  ;;  %v590_v57 = vmul.f32 %v2290_v53, %v531_v47 }
  0xf7   : > { %v533_v59 = vpop.f32.mrf.mxu0 }
  0xf8   : > { %v697_v61 = vadd.f32 %v681_v50, %v645_v48  ;;  %v610_v62 = vadd.f32 %v2295_v55, %v590_v57  ;;  %v630_v63 = vmul.f32 %v2298_v56, %v533_v59  ;;  %v662_v0 = vmul.f32 %v533_v59, %v531_v47 }
  0xf9   : > { %v535_v1 = vpop.f32.mrf.mxu0 }
  0xfa   : > { %v591_v3 = vmul.f32 %v2290_v53, %v535_v1  ;;  %v727_v4 = vpack.c.bf16 %v697_v61, %v696_v58  ;;  %v646_v5 = vadd.f32 %v630_v63, %v610_v62  ;;  %v682_v6 = vmul.f32 %v2302_v60, %v662_v0 }
  0xfb   : > { %v537_v7 = vpop.f32.mrf.mxu0 }
  0xfc   : > { %v611_v8 = vadd.f32 %v2295_v55, %v591_v3  ;;  %v631_v9 = vmul.f32 %v2298_v56, %v537_v7  ;;  %v663_v10 = vmul.f32 %v537_v7, %v535_v1  ;;  %866 = vmatmul.mubr.bf16.gmra.mxu1 %v727_v4  ;;  %v698_v15 = vadd.f32 %v682_v6, %v646_v5 }
  0xfd   : > { %v541_v11 = vpop.f32.mrf.mxu0  ;;  %875 = vmatprep.mubr.bf16.mxu1 %v2073_v2 }
  0xfe   : > { %v647_v12 = vadd.f32 %v631_v9, %v611_v8  ;;  %v683_v13 = vmul.f32 %v2302_v60, %v663_v10  ;;  %v592_v14 = vmul.f32 %v2290_v53, %v541_v11 }
  0xff   : > { %v543_v16 = vpop.f32.mrf.mxu0 }
 0x100   : > { %v699_v17 = vadd.f32 %v683_v13, %v647_v12  ;;  %v612_v18 = vadd.f32 %v2295_v55, %v592_v14  ;;  %v632_v19 = vmul.f32 %v2298_v56, %v543_v16  ;;  %v664_v20 = vmul.f32 %v543_v16, %v541_v11 }
 0x101   : > { %v545_v21 = vpop.f32.mrf.mxu0 }
 0x102   : > { %v593_v22 = vmul.f32 %v2290_v53, %v545_v21  ;;  %v728_v23 = vpack.c.bf16 %v699_v17, %v698_v15  ;;  %v648_v24 = vadd.f32 %v632_v19, %v612_v18  ;;  %v684_v25 = vmul.f32 %v2302_v60, %v664_v20 }
 0x103   : > { %v547_v26 = vpop.f32.mrf.mxu0 }
 0x104   : > { %v613_v27 = vadd.f32 %v2295_v55, %v593_v22  ;;  %v633_v28 = vmul.f32 %v2298_v56, %v547_v26  ;;  %v665_v29 = vmul.f32 %v547_v26, %v545_v21  ;;  %876 = vmatmul.mubr.bf16.gmra.mxu1 %v728_v23  ;;  %v700_v34 = vadd.f32 %v684_v25, %v648_v24 }
 0x105   : > { %v551_v30 = vpop.f32.mrf.mxu0  ;;  %885 = vmatprep.mubr.bf16.mxu1 %v2073_v2 }
 0x106   : > { %v649_v31 = vadd.f32 %v633_v28, %v613_v27  ;;  %v685_v32 = vmul.f32 %v2302_v60, %v665_v29  ;;  %v594_v33 = vmul.f32 %v2290_v53, %v551_v30 }
 0x107   : > { %v553_v35 = vpop.f32.mrf.mxu0 }
 0x108   : > { %v701_v36 = vadd.f32 %v685_v32, %v649_v31  ;;  %v614_v37 = vadd.f32 %v2295_v55, %v594_v33  ;;  %v634_v38 = vmul.f32 %v2298_v56, %v553_v35  ;;  %v666_v39 = vmul.f32 %v553_v35, %v551_v30 }
 0x109   : > { %v555_v40 = vpop.f32.mrf.mxu0 }
 0x10a   : > { %v595_v41 = vmul.f32 %v2290_v53, %v555_v40  ;;  %v729_v42 = vpack.c.bf16 %v701_v36, %v700_v34  ;;  %v650_v43 = vadd.f32 %v634_v38, %v614_v37  ;;  %v686_v44 = vmul.f32 %v2302_v60, %v666_v39  ;;  %v1995_v37 = vld [vmem:[%s2704_s7 + $0x28] sm:$0xff]   ;;  %v724_v38 = vld [vmem:[%s2701_s4] sm:$0xf] }
 0x10b   : > { %v557_v45 = vpop.f32.mrf.mxu0  ;;  %v2393_v39 = vrot.slane %v724_v38, %v2280_v49 }
 0x10c   : > { %v615_v46 = vadd.f32 %v2295_v55, %v595_v41  ;;  %v635_v47 = vmul.f32 %v2298_v56, %v557_v45  ;;  %v667_v48 = vmul.f32 %v557_v45, %v555_v40  ;;  %886 = vmatmul.mubr.bf16.gmra.mxu1 %v729_v42  ;;  %v702_v61 = vadd.f32 %v686_v44, %v650_v43 }
 0x10d   : > { %v561_v50 = vpop.f32.mrf.mxu0  ;;  %895 = vmatprep.mubr.bf16.mxu1 %v2073_v2  ;;  %v2396_v40 = vrot.slane %v724_v38, %v2285_v51  ;;  %v2399_v41 = vrot.slane %v724_v38, %v2287_v52  ;;  %v2403_v45 = vrot.slane %v724_v38, %v2292_v54 }
 0x10e   : > { %v651_v57 = vadd.f32 %v635_v47, %v615_v46  ;;  %v687_v58 = vmul.f32 %v2302_v60, %v667_v48  ;;  %v596_v59 = vmul.f32 %v2290_v53, %v561_v50 }
 0x10f   : > { %v563_v62 = vpop.f32.mrf.mxu0 }
 0x110   : > { %v703_v63 = vadd.f32 %v687_v58, %v651_v57  ;;  %v616_v0 = vadd.f32 %v2295_v55, %v596_v59  ;;  %v636_v1 = vmul.f32 %v2298_v56, %v563_v62  ;;  %v668_v3 = vmul.f32 %v563_v62, %v561_v50 }
 0x111   : > { %v565_v4 = vpop.f32.mrf.mxu0 }
 0x112   : > { %v597_v5 = vmul.f32 %v2290_v53, %v565_v4  ;;  %v730_v6 = vpack.c.bf16 %v703_v63, %v702_v61  ;;  %v652_v7 = vadd.f32 %v636_v1, %v616_v0  ;;  %v688_v8 = vmul.f32 %v2302_v60, %v668_v3 }
 0x113   : > { %v567_v9 = vpop.f32.mrf.mxu0 }
 0x114   : > { %v617_v10 = vadd.f32 %v2295_v55, %v597_v5  ;;  %v637_v11 = vmul.f32 %v2298_v56, %v567_v9  ;;  %v669_v12 = vmul.f32 %v567_v9, %v565_v4  ;;  %896 = vmatmul.mubr.bf16.gmra.mxu1 %v730_v6  ;;  %v704_v17 = vadd.f32 %v688_v8, %v652_v7 }
 0x115   : > { %v571_v13 = vpop.f32.mrf.mxu0  ;;  %905 = vmatprep.mubr.bf16.mxu1 %v2073_v2 }
 0x116   : > { %v653_v14 = vadd.f32 %v637_v11, %v617_v10  ;;  %v689_v15 = vmul.f32 %v2302_v60, %v669_v12  ;;  %v598_v16 = vmul.f32 %v2290_v53, %v571_v13 }
 0x117   : > { %v573_v18 = vpop.f32.mrf.mxu0 }
 0x118   : > { %v705_v19 = vadd.f32 %v689_v15, %v653_v14  ;;  %v618_v20 = vadd.f32 %v2295_v55, %v598_v16  ;;  %v638_v21 = vmul.f32 %v2298_v56, %v573_v18  ;;  %v670_v22 = vmul.f32 %v573_v18, %v571_v13 }
 0x119   : > { %v575_v23 = vpop.f32.mrf.mxu0 }
 0x11a   : > { %v599_v24 = vmul.f32 %v2290_v53, %v575_v23  ;;  %v731_v25 = vpack.c.bf16 %v705_v19, %v704_v17  ;;  %v654_v26 = vadd.f32 %v638_v21, %v618_v20  ;;  %v690_v28 = vmul.f32 %v2302_v60, %v670_v22  ;;  %v1992_v53 = vld [vmem:[%s2702_s5 + $0x4] ss:$8 sps:$4 sm:$0xff]  }
 0x11b   : > { %v577_v27 = vpop.f32.mrf.mxu0  ;;  %1173 = vmatprep.subr.bf16.mxu0 %v1992_v53 }
 0x11c   : > { %v619_v29 = vadd.f32 %v2295_v55, %v599_v24  ;;  %v639_v30 = vmul.f32 %v2298_v56, %v577_v27  ;;  %v671_v31 = vmul.f32 %v577_v27, %v575_v23  ;;  %906 = vmatmul.mubr.bf16.gmra.mxu1 %v731_v25  ;;  %v706_v34 = vadd.f32 %v690_v28, %v654_v26  ;;  %v1990_v55 = vld [vmem:[%s2702_s5] ss:$8 sps:$4 sm:$0xff]   ;;  %v1993_v56 = vld [vmem:[%s2704_s7 + $0x38] sm:$0xff]  }
 0x11d   : > { %915 = vmatprep.mubr.bf16.mxu1 %v2073_v2  ;;  %1174 = vmatpush1.bf16.msra.mxu0 %v1990_v55 }
 0x11e   : > { %v655_v32 = vadd.f32 %v639_v30, %v619_v29  ;;  %v691_v33 = vmul.f32 %v2302_v60, %v671_v31  ;;  %v1994_v60 = vld [vmem:[%s2704_s7 + $0x30] sm:$0xff]   ;;  %1884 = vmatprep.subr.bf16.mxu1 %v1993_v56 }
 0x11f   : > { %1885 = vmatpush3.bf16.msra.mxu1 %v1993_v56 }
 0x120   : > { %v707_v35 = vadd.f32 %v691_v33, %v655_v32  ;;  %1886 = vmatprep.subr.bf16.mxu1 %v1994_v60 }
 0x122   : > { %v732_v36 = vpack.c.bf16 %v707_v35, %v706_v34 }
 0x123   : > { %1887 = vmatpush3.bf16.msra.mxu1 %v1994_v60 }
 0x124   : > { %916 = vmatmul.mubr.bf16.gmra.mxu1 %v732_v36  ;;  %1888 = vmatprep.subr.bf16.mxu1 %v1995_v37 }
 0x127   : > { %1889 = vmatpush3.bf16.msra.mxu1 %v1995_v37 }
 0x1ac   : > { %v847_v42 = vpop.f32.mrf.mxu1 }
 0x1ad   : > { %v930_v43 = vmul.f32 %v2393_v39, %v847_v42 }
 0x1ae   : > { %v849_v44 = vpop.f32.mrf.mxu1 }
 0x1af   : > { %v950_v46 = vadd.f32 %v2396_v40, %v930_v43  ;;  %v970_v47 = vmul.f32 %v2399_v41, %v849_v44  ;;  %v1002_v48 = vmul.f32 %v849_v44, %v847_v42 }
 0x1b0   : > { %v851_v50 = vpop.f32.mrf.mxu1 }
 0x1b1   : > { %v931_v57 = vmul.f32 %v2393_v39, %v851_v50  ;;  %v986_v58 = vadd.f32 %v970_v47, %v950_v46  ;;  %v1022_v59 = vmul.f32 %v2403_v45, %v1002_v48 }
 0x1b2   : > { %v853_v61 = vpop.f32.mrf.mxu1 }
 0x1b3   : > { %v951_v62 = vadd.f32 %v2396_v40, %v931_v57  ;;  %v971_v63 = vmul.f32 %v2399_v41, %v853_v61  ;;  %v1003_v0 = vmul.f32 %v853_v61, %v851_v50  ;;  %v1038_v6 = vadd.f32 %v1022_v59, %v986_v58 }
 0x1b4   : > { %v857_v1 = vpop.f32.mrf.mxu1 }
 0x1b5   : > { %v987_v3 = vadd.f32 %v971_v63, %v951_v62  ;;  %v1023_v4 = vmul.f32 %v2403_v45, %v1003_v0  ;;  %v932_v5 = vmul.f32 %v2393_v39, %v857_v1 }
 0x1b6   : > { %v859_v7 = vpop.f32.mrf.mxu1 }
 0x1b7   : > { %v1039_v8 = vadd.f32 %v1023_v4, %v987_v3  ;;  %v952_v9 = vadd.f32 %v2396_v40, %v932_v5  ;;  %v972_v10 = vmul.f32 %v2399_v41, %v859_v7  ;;  %v1004_v11 = vmul.f32 %v859_v7, %v857_v1 }
 0x1b8   : > { %v861_v12 = vpop.f32.mrf.mxu1 }
 0x1b9   : > { %v1071_v13 = vpack.c.bf16 %v1039_v8, %v1038_v6  ;;  %v933_v14 = vmul.f32 %v2393_v39, %v861_v12  ;;  %v988_v15 = vadd.f32 %v972_v10, %v952_v9  ;;  %v1024_v16 = vmul.f32 %v2403_v45, %v1004_v11 }
 0x1ba   : > { %v863_v17 = vpop.f32.mrf.mxu1 }
 0x1bb   : > { %v953_v18 = vadd.f32 %v2396_v40, %v933_v14  ;;  %v973_v19 = vmul.f32 %v2399_v41, %v863_v17  ;;  %v1005_v20 = vmul.f32 %v863_v17, %v861_v12  ;;  %1192 = vmatmul.mubr.bf16.vlgmr.msra.gmra.mxu0 %v1071_v13  ;;  %v1040_v25 = vadd.f32 %v1024_v16, %v988_v15 }
 0x1bc   : > { %v867_v21 = vpop.f32.mrf.mxu1  ;;  %1201 = vmatprep.mubr.bf16.mxu0 %v2073_v2 }
 0x1bd   : > { %v989_v22 = vadd.f32 %v973_v19, %v953_v18  ;;  %v1025_v23 = vmul.f32 %v2403_v45, %v1005_v20  ;;  %v934_v24 = vmul.f32 %v2393_v39, %v867_v21 }
 0x1be   : > { %v869_v26 = vpop.f32.mrf.mxu1 }
 0x1bf   : > { %v1041_v27 = vadd.f32 %v1025_v23, %v989_v22  ;;  %v954_v28 = vadd.f32 %v2396_v40, %v934_v24  ;;  %v974_v29 = vmul.f32 %v2399_v41, %v869_v26  ;;  %v1006_v30 = vmul.f32 %v869_v26, %v867_v21 }
 0x1c0   : > { %v871_v31 = vpop.f32.mrf.mxu1 }
 0x1c1   : > { %v935_v32 = vmul.f32 %v2393_v39, %v871_v31  ;;  %v1072_v33 = vpack.c.bf16 %v1041_v27, %v1040_v25  ;;  %v990_v34 = vadd.f32 %v974_v29, %v954_v28  ;;  %v1026_v35 = vmul.f32 %v2403_v45, %v1006_v30 }
 0x1c2   : > { %v873_v36 = vpop.f32.mrf.mxu1 }
 0x1c3   : > { %v955_v53 = vadd.f32 %v2396_v40, %v935_v32  ;;  %v975_v55 = vmul.f32 %v2399_v41, %v873_v36  ;;  %v1007_v56 = vmul.f32 %v873_v36, %v871_v31  ;;  %1202 = vmatmul.mubr.bf16.gmra.mxu0 %v1072_v33  ;;  %v1042_v43 = vadd.f32 %v1026_v35, %v990_v34 }
 0x1c4   : > { %v877_v60 = vpop.f32.mrf.mxu1  ;;  %1211 = vmatprep.mubr.bf16.mxu0 %v2073_v2 }
 0x1c5   : > { %v991_v37 = vadd.f32 %v975_v55, %v955_v53  ;;  %v1027_v38 = vmul.f32 %v2403_v45, %v1007_v56  ;;  %v936_v42 = vmul.f32 %v2393_v39, %v877_v60 }
 0x1c6   : > { %v879_v44 = vpop.f32.mrf.mxu1 }
 0x1c7   : > { %v1043_v46 = vadd.f32 %v1027_v38, %v991_v37  ;;  %v956_v47 = vadd.f32 %v2396_v40, %v936_v42  ;;  %v976_v48 = vmul.f32 %v2399_v41, %v879_v44  ;;  %v1008_v50 = vmul.f32 %v879_v44, %v877_v60 }
 0x1c8   : > { %v881_v57 = vpop.f32.mrf.mxu1 }
 0x1c9   : > { %v937_v58 = vmul.f32 %v2393_v39, %v881_v57  ;;  %v1073_v59 = vpack.c.bf16 %v1043_v46, %v1042_v43  ;;  %v992_v61 = vadd.f32 %v976_v48, %v956_v47  ;;  %v1028_v62 = vmul.f32 %v2403_v45, %v1008_v50 }
 0x1ca   : > { %v883_v63 = vpop.f32.mrf.mxu1 }
 0x1cb   : > { %v957_v0 = vadd.f32 %v2396_v40, %v937_v58  ;;  %v977_v1 = vmul.f32 %v2399_v41, %v883_v63  ;;  %v1009_v3 = vmul.f32 %v883_v63, %v881_v57  ;;  %1212 = vmatmul.mubr.bf16.gmra.mxu0 %v1073_v59  ;;  %v1044_v8 = vadd.f32 %v1028_v62, %v992_v61 }
 0x1cc   : > { %v887_v4 = vpop.f32.mrf.mxu1  ;;  %1221 = vmatprep.mubr.bf16.mxu0 %v2073_v2 }
 0x1cd   : > { %v993_v5 = vadd.f32 %v977_v1, %v957_v0  ;;  %v1029_v6 = vmul.f32 %v2403_v45, %v1009_v3  ;;  %v938_v7 = vmul.f32 %v2393_v39, %v887_v4 }
 0x1ce   : > { %v889_v9 = vpop.f32.mrf.mxu1 }
 0x1cf   : > { %v1045_v10 = vadd.f32 %v1029_v6, %v993_v5  ;;  %v958_v11 = vadd.f32 %v2396_v40, %v938_v7  ;;  %v978_v12 = vmul.f32 %v2399_v41, %v889_v9  ;;  %v1010_v13 = vmul.f32 %v889_v9, %v887_v4 }
 0x1d0   : > { %v891_v14 = vpop.f32.mrf.mxu1 }
 0x1d1   : > { %v939_v15 = vmul.f32 %v2393_v39, %v891_v14  ;;  %v1074_v16 = vpack.c.bf16 %v1045_v10, %v1044_v8  ;;  %v994_v17 = vadd.f32 %v978_v12, %v958_v11  ;;  %v1030_v18 = vmul.f32 %v2403_v45, %v1010_v13 }
 0x1d2   : > { %v893_v19 = vpop.f32.mrf.mxu1 }
 0x1d3   : > { %v959_v20 = vadd.f32 %v2396_v40, %v939_v15  ;;  %v979_v21 = vmul.f32 %v2399_v41, %v893_v19  ;;  %v1011_v22 = vmul.f32 %v893_v19, %v891_v14  ;;  %1222 = vmatmul.mubr.bf16.gmra.mxu0 %v1074_v16  ;;  %v1046_v27 = vadd.f32 %v1030_v18, %v994_v17 }
 0x1d4   : > { %v897_v23 = vpop.f32.mrf.mxu1  ;;  %1231 = vmatprep.mubr.bf16.mxu0 %v2073_v2 }
 0x1d5   : > { %v995_v24 = vadd.f32 %v979_v21, %v959_v20  ;;  %v1031_v25 = vmul.f32 %v2403_v45, %v1011_v22  ;;  %v940_v26 = vmul.f32 %v2393_v39, %v897_v23 }
 0x1d6   : > { %v899_v28 = vpop.f32.mrf.mxu1 }
 0x1d7   : > { %v1047_v29 = vadd.f32 %v1031_v25, %v995_v24  ;;  %v960_v30 = vadd.f32 %v2396_v40, %v940_v26  ;;  %v980_v31 = vmul.f32 %v2399_v41, %v899_v28  ;;  %v1012_v32 = vmul.f32 %v899_v28, %v897_v23 }
 0x1d8   : > { %v901_v33 = vpop.f32.mrf.mxu1 }
 0x1d9   : > { %v941_v34 = vmul.f32 %v2393_v39, %v901_v33  ;;  %v1075_v35 = vpack.c.bf16 %v1047_v29, %v1046_v27  ;;  %v996_v36 = vadd.f32 %v980_v31, %v960_v30  ;;  %v1032_v53 = vmul.f32 %v2403_v45, %v1012_v32  ;;  %v1070_v30 = vld [vmem:[%s2703_s6] sm:$0xf] }
 0x1da   : > { %v903_v55 = vpop.f32.mrf.mxu1  ;;  %v2494_v31 = vrot.slane %v1070_v30, %v2280_v49  ;;  %v2497_v32 = vrot.slane %v1070_v30, %v2285_v51 }
 0x1db   : > { %v961_v56 = vadd.f32 %v2396_v40, %v941_v34  ;;  %v981_v60 = vmul.f32 %v2399_v41, %v903_v55  ;;  %v1013_v37 = vmul.f32 %v903_v55, %v901_v33  ;;  %1232 = vmatmul.mubr.bf16.gmra.mxu0 %v1075_v35  ;;  %v1048_v46 = vadd.f32 %v1032_v53, %v996_v36 }
 0x1dc   : > { %v907_v38 = vpop.f32.mrf.mxu1  ;;  %1241 = vmatprep.mubr.bf16.mxu0 %v2073_v2  ;;  %v2500_v33 = vrot.slane %v1070_v30, %v2287_v52  ;;  %v2504_v53 = vrot.slane %v1070_v30, %v2292_v54 }
 0x1dd   : > { %v997_v42 = vadd.f32 %v981_v60, %v961_v56  ;;  %v1033_v43 = vmul.f32 %v2403_v45, %v1013_v37  ;;  %v942_v44 = vmul.f32 %v2393_v39, %v907_v38 }
 0x1de   : > { %v909_v47 = vpop.f32.mrf.mxu1 }
 0x1df   : > { %v1049_v48 = vadd.f32 %v1033_v43, %v997_v42  ;;  %v962_v50 = vadd.f32 %v2396_v40, %v942_v44  ;;  %v982_v57 = vmul.f32 %v2399_v41, %v909_v47  ;;  %v1014_v58 = vmul.f32 %v909_v47, %v907_v38 }
 0x1e0   : > { %v911_v59 = vpop.f32.mrf.mxu1 }
 0x1e1   : > { %v943_v61 = vmul.f32 %v2393_v39, %v911_v59  ;;  %v1076_v62 = vpack.c.bf16 %v1049_v48, %v1048_v46  ;;  %v998_v63 = vadd.f32 %v982_v57, %v962_v50  ;;  %v1034_v0 = vmul.f32 %v2403_v45, %v1014_v58 }
 0x1e2   : > { %v913_v1 = vpop.f32.mrf.mxu1 }
 0x1e3   : > { %v963_v3 = vadd.f32 %v2396_v40, %v943_v61  ;;  %v983_v4 = vmul.f32 %v2399_v41, %v913_v1  ;;  %v1015_v5 = vmul.f32 %v913_v1, %v911_v59  ;;  %1242 = vmatmul.mubr.bf16.gmra.mxu0 %v1076_v62  ;;  %v1050_v10 = vadd.f32 %v1034_v0, %v998_v63 }
 0x1e4   : > { %v917_v6 = vpop.f32.mrf.mxu1  ;;  %1251 = vmatprep.mubr.bf16.mxu0 %v2073_v2 }
 0x1e5   : > { %v999_v7 = vadd.f32 %v983_v4, %v963_v3  ;;  %v1035_v8 = vmul.f32 %v2403_v45, %v1015_v5  ;;  %v944_v9 = vmul.f32 %v2393_v39, %v917_v6 }
 0x1e6   : > { %v919_v11 = vpop.f32.mrf.mxu1 }
 0x1e7   : > { %v1051_v12 = vadd.f32 %v1035_v8, %v999_v7  ;;  %v964_v13 = vadd.f32 %v2396_v40, %v944_v9  ;;  %v984_v14 = vmul.f32 %v2399_v41, %v919_v11  ;;  %v1016_v15 = vmul.f32 %v919_v11, %v917_v6 }
 0x1e8   : > { %v921_v16 = vpop.f32.mrf.mxu1 }
 0x1e9   : > { %v945_v17 = vmul.f32 %v2393_v39, %v921_v16  ;;  %v1077_v18 = vpack.c.bf16 %v1051_v12, %v1050_v10  ;;  %v1000_v19 = vadd.f32 %v984_v14, %v964_v13  ;;  %v1036_v21 = vmul.f32 %v2403_v45, %v1016_v15  ;;  %v1996_v39 = vld [vmem:[%s2704_s7 + $0x20] sm:$0xff]  }
 0x1ea   : > { %v923_v20 = vpop.f32.mrf.mxu1  ;;  %1890 = vmatprep.subr.bf16.mxu1 %v1996_v39 }
 0x1eb   : > { %v965_v22 = vadd.f32 %v2396_v40, %v945_v17  ;;  %v985_v23 = vmul.f32 %v2399_v41, %v923_v20  ;;  %v1017_v24 = vmul.f32 %v923_v20, %v921_v16  ;;  %1252 = vmatmul.mubr.bf16.gmra.mxu0 %v1077_v18  ;;  %v1052_v27 = vadd.f32 %v1036_v21, %v1000_v19  ;;  %v1997_v40 = vld [vmem:[%s2704_s7 + $0x18] sm:$0xff]   ;;  %v1999_v41 = vld [vmem:[%s2704_s7 + $0x8] sm:$0xff]  }
 0x1ec   : > { %1261 = vmatprep.mubr.bf16.mxu0 %v2073_v2  ;;  %1891 = vmatpush3.bf16.msra.mxu1 %v1996_v39  ;;  %v1998_v2 = vld [vmem:[%s2704_s7 + $0x10] sm:$0xff]  }
 0x1ed   : > { %v1001_v25 = vadd.f32 %v985_v23, %v965_v22  ;;  %v1037_v26 = vmul.f32 %v2403_v45, %v1017_v24  ;;  %1892 = vmatprep.subr.bf16.mxu1 %v1997_v40  ;;  %v2000_v45 = vld [vmem:[%s2704_s7] sm:$0xff]  }
 0x1ef   : > { %v1053_v28 = vadd.f32 %v1037_v26, %v1001_v25 }
 0x1f0   : > { %1893 = vmatpush3.bf16.msra.mxu1 %v1997_v40 }
 0x1f1   : > { %v1078_v29 = vpack.c.bf16 %v1053_v28, %v1052_v27  ;;  %1894 = vmatprep.subr.bf16.mxu1 %v1998_v2 }
 0x1f3   : > { %1262 = vmatmul.mubr.bf16.gmra.mxu0 %v1078_v29 }
 0x1f4   : > { %1895 = vmatpush3.bf16.msra.mxu1 %v1998_v2 }
 0x1f5   : > { %1896 = vmatprep.subr.bf16.mxu1 %v1999_v41 }
 0x1f8   : > { %1897 = vmatpush3.bf16.msra.mxu1 %v1999_v41 }
 0x1f9   : > { %1898 = vmatprep.subr.bf16.mxu1 %v2000_v45 }
 0x1fc   : > { %1899 = vmatpush3.bf16.msra.mxu1 %v2000_v45 }
 0x27b   : > { %v1193_v34 = vpop.f32.mrf.mxu0 }
 0x27c   : > { %v1276_v35 = vmul.f32 %v2494_v31, %v1193_v34 }
 0x27d   : > { %v1195_v36 = vpop.f32.mrf.mxu0 }
 0x27e   : > { %v1296_v55 = vadd.f32 %v2497_v32, %v1276_v35  ;;  %v1316_v56 = vmul.f32 %v2500_v33, %v1195_v36  ;;  %v1348_v60 = vmul.f32 %v1195_v36, %v1193_v34 }
 0x27f   : > { %v1197_v49 = vpop.f32.mrf.mxu0 }
 0x280   : > { %v1277_v37 = vmul.f32 %v2494_v31, %v1197_v49  ;;  %v1332_v51 = vadd.f32 %v1316_v56, %v1296_v55  ;;  %v1368_v38 = vmul.f32 %v2504_v53, %v1348_v60 }
 0x281   : > { %v1199_v52 = vpop.f32.mrf.mxu0 }
 0x282   : > { %v1297_v42 = vadd.f32 %v2497_v32, %v1277_v37  ;;  %v1317_v43 = vmul.f32 %v2500_v33, %v1199_v52  ;;  %v1349_v44 = vmul.f32 %v1199_v52, %v1197_v49  ;;  %v1384_v50 = vadd.f32 %v1368_v38, %v1332_v51 }
 0x283   : > { %v1203_v46 = vpop.f32.mrf.mxu0 }
 0x284   : > { %v1333_v54 = vadd.f32 %v1317_v43, %v1297_v42  ;;  %v1369_v47 = vmul.f32 %v2504_v53, %v1349_v44  ;;  %v1278_v48 = vmul.f32 %v2494_v31, %v1203_v46 }
 0x285   : > { %v1205_v57 = vpop.f32.mrf.mxu0 }
 0x286   : > { %v1385_v58 = vadd.f32 %v1369_v47, %v1333_v54  ;;  %v1298_v59 = vadd.f32 %v2497_v32, %v1278_v48  ;;  %v1318_v61 = vmul.f32 %v2500_v33, %v1205_v57  ;;  %v1350_v62 = vmul.f32 %v1205_v57, %v1203_v46 }
 0x287   : > { %v1207_v63 = vpop.f32.mrf.mxu0 }
 0x288   : > { %v1279_v0 = vmul.f32 %v2494_v31, %v1207_v63  ;;  %v1400_v1 = vpack.c.bf16 %v1385_v58, %v1384_v50  ;;  %v1334_v3 = vadd.f32 %v1318_v61, %v1298_v59  ;;  %v1370_v4 = vmul.f32 %v2504_v53, %v1350_v62 }
 0x289   : > { %v1209_v5 = vpop.f32.mrf.mxu0 }
 0x28a   : > { %v1299_v6 = vadd.f32 %v2497_v32, %v1279_v0  ;;  %v1319_v7 = vmul.f32 %v2500_v33, %v1209_v5  ;;  %v1351_v8 = vmul.f32 %v1209_v5, %v1207_v63  ;;  %1900 = vmatprep.mubr.bf16.mxu1 %v1400_v1  ;;  %v1386_v13 = vadd.f32 %v1370_v4, %v1334_v3 }
 0x28b   : > { %v1213_v9 = vpop.f32.mrf.mxu0 }
 0x28c   : > { %v1335_v10 = vadd.f32 %v1319_v7, %v1299_v6  ;;  %v1371_v11 = vmul.f32 %v2504_v53, %v1351_v8  ;;  %v1280_v12 = vmul.f32 %v2494_v31, %v1213_v9 }
 0x28d   : > { %v1215_v14 = vpop.f32.mrf.mxu0 }
 0x28e   : > { %v1387_v15 = vadd.f32 %v1371_v11, %v1335_v10  ;;  %v1300_v16 = vadd.f32 %v2497_v32, %v1280_v12  ;;  %v1320_v17 = vmul.f32 %v2500_v33, %v1215_v14  ;;  %v1352_v18 = vmul.f32 %v1215_v14, %v1213_v9 }
 0x28f   : > { %v1217_v19 = vpop.f32.mrf.mxu0 }
 0x290   : > { %v1401_v20 = vpack.c.bf16 %v1387_v15, %v1386_v13  ;;  %v1281_v21 = vmul.f32 %v2494_v31, %v1217_v19  ;;  %v1336_v22 = vadd.f32 %v1320_v17, %v1300_v16  ;;  %v1372_v23 = vmul.f32 %v2504_v53, %v1352_v18 }
 0x291   : > { %v1219_v24 = vpop.f32.mrf.mxu0 }
 0x292   : > { %v1301_v25 = vadd.f32 %v2497_v32, %v1281_v21  ;;  %v1321_v26 = vmul.f32 %v2500_v33, %v1219_v24  ;;  %v1353_v27 = vmul.f32 %v1219_v24, %v1217_v19  ;;  %1901 = vmatmul.mubr.bf16.vlgmr.msra.gmra.mxu1 %v1401_v20  ;;  %v1388_v2 = vadd.f32 %v1372_v23, %v1336_v22 }
 0x293   : > { %v1223_v28 = vpop.f32.mrf.mxu0 }
 0x294   : > { %v1337_v29 = vadd.f32 %v1321_v26, %v1301_v25  ;;  %v1373_v39 = vmul.f32 %v2504_v53, %v1353_v27  ;;  %v1282_v40 = vmul.f32 %v2494_v31, %v1223_v28 }
 0x295   : > { %v1225_v41 = vpop.f32.mrf.mxu0 }
 0x296   : > { %v1389_v45 = vadd.f32 %v1373_v39, %v1337_v29  ;;  %v1302_v30 = vadd.f32 %v2497_v32, %v1282_v40  ;;  %v1322_v34 = vmul.f32 %v2500_v33, %v1225_v41  ;;  %v1354_v35 = vmul.f32 %v1225_v41, %v1223_v28 }
 0x297   : > { %v1227_v36 = vpop.f32.mrf.mxu0 }
 0x298   : > { %v1283_v55 = vmul.f32 %v2494_v31, %v1227_v36  ;;  %v1402_v56 = vpack.c.bf16 %v1389_v45, %v1388_v2  ;;  %v1338_v60 = vadd.f32 %v1322_v34, %v1302_v30  ;;  %v1374_v49 = vmul.f32 %v2504_v53, %v1354_v35 }
 0x299   : > { %v1229_v37 = vpop.f32.mrf.mxu0 }
 0x29a   : > { %v1303_v51 = vadd.f32 %v2497_v32, %v1283_v55  ;;  %v1323_v38 = vmul.f32 %v2500_v33, %v1229_v37  ;;  %v1355_v52 = vmul.f32 %v1229_v37, %v1227_v36  ;;  %1904 = vmatprep.mubr.bf16.mxu1 %v1402_v56  ;;  %v1390_v54 = vadd.f32 %v1374_v49, %v1338_v60 }
 0x29b   : > { %v1233_v42 = vpop.f32.mrf.mxu0 }
 0x29c   : > { %v1339_v43 = vadd.f32 %v1323_v38, %v1303_v51  ;;  %v1375_v44 = vmul.f32 %v2504_v53, %v1355_v52  ;;  %v1284_v46 = vmul.f32 %v2494_v31, %v1233_v42 }
 0x29d   : > { %v1235_v47 = vpop.f32.mrf.mxu0 }
 0x29e   : > { %v1391_v48 = vadd.f32 %v1375_v44, %v1339_v43  ;;  %v1304_v50 = vadd.f32 %v2497_v32, %v1284_v46  ;;  %v1324_v57 = vmul.f32 %v2500_v33, %v1235_v47  ;;  %v1356_v58 = vmul.f32 %v1235_v47, %v1233_v42 }
 0x29f   : > { %v1237_v59 = vpop.f32.mrf.mxu0 }
 0x2a0   : > { %v1285_v61 = vmul.f32 %v2494_v31, %v1237_v59  ;;  %v1403_v62 = vpack.c.bf16 %v1391_v48, %v1390_v54  ;;  %v1340_v63 = vadd.f32 %v1324_v57, %v1304_v50  ;;  %v1376_v0 = vmul.f32 %v2504_v53, %v1356_v58 }
 0x2a1   : > { %v1239_v1 = vpop.f32.mrf.mxu0 }
 0x2a2   : > { %v1305_v3 = vadd.f32 %v2497_v32, %v1285_v61  ;;  %v1325_v4 = vmul.f32 %v2500_v33, %v1239_v1  ;;  %v1357_v5 = vmul.f32 %v1239_v1, %v1237_v59  ;;  %1905 = vmatmul.mubr.bf16.gmra.mxu1 %v1403_v62  ;;  %v1392_v10 = vadd.f32 %v1376_v0, %v1340_v63 }
 0x2a3   : > { %v1243_v6 = vpop.f32.mrf.mxu0 }
 0x2a4   : > { %v1341_v7 = vadd.f32 %v1325_v4, %v1305_v3  ;;  %v1377_v8 = vmul.f32 %v2504_v53, %v1357_v5  ;;  %v1286_v9 = vmul.f32 %v2494_v31, %v1243_v6 }
 0x2a5   : > { %v1245_v11 = vpop.f32.mrf.mxu0 }
 0x2a6   : > { %v1393_v12 = vadd.f32 %v1377_v8, %v1341_v7  ;;  %v1306_v13 = vadd.f32 %v2497_v32, %v1286_v9  ;;  %v1326_v14 = vmul.f32 %v2500_v33, %v1245_v11  ;;  %v1358_v15 = vmul.f32 %v1245_v11, %v1243_v6 }
 0x2a7   : > { %v1247_v16 = vpop.f32.mrf.mxu0 }
 0x2a8   : > { %v1287_v17 = vmul.f32 %v2494_v31, %v1247_v16  ;;  %v1404_v18 = vpack.c.bf16 %v1393_v12, %v1392_v10  ;;  %v1342_v19 = vadd.f32 %v1326_v14, %v1306_v13  ;;  %v1378_v20 = vmul.f32 %v2504_v53, %v1358_v15 }
 0x2a9   : > { %v1249_v21 = vpop.f32.mrf.mxu0 }
 0x2aa   : > { %v1307_v22 = vadd.f32 %v2497_v32, %v1287_v17  ;;  %v1327_v23 = vmul.f32 %v2500_v33, %v1249_v21  ;;  %v1359_v24 = vmul.f32 %v1249_v21, %v1247_v16  ;;  %1908 = vmatprep.mubr.bf16.mxu1 %v1404_v18  ;;  %v1394_v29 = vadd.f32 %v1378_v20, %v1342_v19 }
 0x2ab   : > { %v1253_v25 = vpop.f32.mrf.mxu0 }
 0x2ac   : > { %v1343_v26 = vadd.f32 %v1327_v23, %v1307_v22  ;;  %v1379_v27 = vmul.f32 %v2504_v53, %v1359_v24  ;;  %v1288_v28 = vmul.f32 %v2494_v31, %v1253_v25 }
 0x2ad   : > { %v1255_v39 = vpop.f32.mrf.mxu0 }
 0x2ae   : > { %v1395_v40 = vadd.f32 %v1379_v27, %v1343_v26  ;;  %v1308_v2 = vadd.f32 %v2497_v32, %v1288_v28  ;;  %v1328_v41 = vmul.f32 %v2500_v33, %v1255_v39  ;;  %v1360_v45 = vmul.f32 %v1255_v39, %v1253_v25 }
 0x2af   : > { %v1257_v30 = vpop.f32.mrf.mxu0 }
 0x2b0   : > { %v1289_v34 = vmul.f32 %v2494_v31, %v1257_v30  ;;  %v1405_v35 = vpack.c.bf16 %v1395_v40, %v1394_v29  ;;  %v1344_v36 = vadd.f32 %v1328_v41, %v1308_v2  ;;  %v1380_v55 = vmul.f32 %v2504_v53, %v1360_v45 }
 0x2b1   : > { %v1259_v56 = vpop.f32.mrf.mxu0 }
 0x2b2   : > { %v1309_v60 = vadd.f32 %v2497_v32, %v1289_v34  ;;  %v1329_v49 = vmul.f32 %v2500_v33, %v1259_v56  ;;  %v1361_v37 = vmul.f32 %v1259_v56, %v1257_v30  ;;  %1909 = vmatmul.mubr.bf16.gmra.mxu1 %v1405_v35  ;;  %v1396_v43 = vadd.f32 %v1380_v55, %v1344_v36 }
 0x2b3   : > { %v1263_v51 = vpop.f32.mrf.mxu0 }
 0x2b4   : > { %v1345_v38 = vadd.f32 %v1329_v49, %v1309_v60  ;;  %v1381_v52 = vmul.f32 %v2504_v53, %v1361_v37  ;;  %v1290_v42 = vmul.f32 %v2494_v31, %v1263_v51 }
 0x2b5   : > { %v1265_v44 = vpop.f32.mrf.mxu0 }
 0x2b6   : > { %v1397_v46 = vadd.f32 %v1381_v52, %v1345_v38  ;;  %v1310_v54 = vadd.f32 %v2497_v32, %v1290_v42  ;;  %v1330_v47 = vmul.f32 %v2500_v33, %v1265_v44  ;;  %v1362_v48 = vmul.f32 %v1265_v44, %v1263_v51 }
 0x2b7   : > { %v1267_v50 = vpop.f32.mrf.mxu0 }
 0x2b8   : > { %v1291_v57 = vmul.f32 %v2494_v31, %v1267_v50  ;;  %v1406_v58 = vpack.c.bf16 %v1397_v46, %v1396_v43  ;;  %v1346_v59 = vadd.f32 %v1330_v47, %v1310_v54  ;;  %v1382_v62 = vmul.f32 %v2504_v53, %v1362_v48  ;;  %v1857_v31 = vld [vmem:[%s2705_s8] ss:$0 sm:$0xff] }
 0x2b9   : > { %v1269_v61 = vpop.f32.mrf.mxu0 }
 0x2ba   : > { %v1311_v63 = vadd.f32 %v2497_v32, %v1291_v57  ;;  %v1331_v0 = vmul.f32 %v2500_v33, %v1269_v61  ;;  %v1363_v1 = vmul.f32 %v1269_v61, %v1267_v50  ;;  %1912 = vmatprep.mubr.bf16.mxu1 %v1406_v58  ;;  %v1398_v5 = vadd.f32 %v1382_v62, %v1346_v59 }
 0x2bc   : > { %v1347_v3 = vadd.f32 %v1331_v0, %v1311_v63  ;;  %v1383_v4 = vmul.f32 %v2504_v53, %v1363_v1 }
 0x2be   : > { %v1399_v6 = vadd.f32 %v1383_v4, %v1347_v3 }
 0x2c0   : > { %v1407_v7 = vpack.c.bf16 %v1399_v6, %v1398_v5 }
 0x2c2   : > { %1913 = vmatmul.mubr.bf16.gmra.mxu1 %v1407_v7 }
 0x352   : > { %v1902_v8 = vpop.f32.mrf.mxu1 }
 0x353   : > { %v1522_v9 = vadd.f32 %v1902_v8, %v1857_v31 }
 0x354   : > { %v1513_v10 = vpop.f32.mrf.mxu1 }
 0x355   : > { %v1514_v11 = vadd.f32 %v1857_v31, %v1513_v10  ;;  %1580 = vmax.xlane.f32.xlu1 %v1522_v9 }
 0x356   : > { %v1903_v32 = vpop.f32.mrf.mxu1 }
 0x357   : > { %v1525_v33 = vadd.f32 %v1903_v32, %v1857_v31  ;;  %1576 = vmax.xlane.f32.xlu0 %v1514_v11 }
 0x358   : > { %v1516_v12 = vpop.f32.mrf.mxu1 }
 0x359   : > { %v1517_v13 = vadd.f32 %v1857_v31, %v1516_v12  ;;  %1582 = vmax.xlane.f32.xlu1 %v1525_v33 }
 0x35b   : > { %1578 = vmax.xlane.f32.xlu0 %v1517_v13 }
 0x362   : > { %v1906_v53 = vpop.f32.mrf.mxu1 }
 0x363   : > { %v1538_v14 = vadd.f32 %v1906_v53, %v1857_v31 }
 0x364   : > { %v1529_v15 = vpop.f32.mrf.mxu1 }
 0x365   : > { %1588 = vmax.xlane.f32.xlu0 %v1538_v14  ;;  %v1530_v17 = vadd.f32 %v1857_v31, %v1529_v15 }
 0x366   : > { %v1907_v16 = vpop.f32.mrf.mxu1 }
 0x367   : > { %v1541_v18 = vadd.f32 %v1907_v16, %v1857_v31 }
 0x368   : > { %v1532_v19 = vpop.f32.mrf.mxu1 }
 0x369   : > { %1590 = vmax.xlane.f32.xlu1 %v1541_v18  ;;  %1584 = vmax.xlane.f32.xlu0 %v1530_v17  ;;  %v2572_v20 = vadd.f32 %v1857_v31, %v1532_v19 }
 0x36d   : > { %1586 = vmax.xlane.f32.xlu1 %v2572_v20 }
 0x372   : > { %v1910_v21 = vpop.f32.mrf.mxu1 }
 0x373   : > { %v2575_v22 = vadd.f32 %v1910_v21, %v1857_v31 }
 0x374   : > { %v1545_v23 = vpop.f32.mrf.mxu1 }
 0x375   : > { %1596 = vmax.xlane.f32.xlu0 %v2575_v22  ;;  %v2578_v25 = vadd.f32 %v1857_v31, %v1545_v23 }
 0x376   : > { %v1911_v24 = vpop.f32.mrf.mxu1 }
 0x377   : > { %v2580_v26 = vadd.f32 %v1911_v24, %v1857_v31 }
 0x378   : > { %v1548_v27 = vpop.f32.mrf.mxu1 }
 0x379   : > { %1598 = vmax.xlane.f32.xlu1 %v2580_v26  ;;  %1592 = vmax.xlane.f32.xlu0 %v2578_v25  ;;  %v2584_v28 = vadd.f32 %v1857_v31, %v1548_v27 }
 0x37d   : > { %1594 = vmax.xlane.f32.xlu1 %v2584_v28 }
 0x382   : > { %v1914_v29 = vpop.f32.mrf.mxu1 }
 0x383   : > { %v2590_v45 = vadd.f32 %v1914_v29, %v1857_v31 }
 0x384   : > { %v1561_v39 = vpop.f32.mrf.mxu1 }
 0x385   : > { %v2587_v40 = vadd.f32 %v1857_v31, %v1561_v39 }
 0x386   : > { %v1915_v2 = vpop.f32.mrf.mxu1 }
 0x387   : > { %1600 = vmax.xlane.f32.xlu0 %v2587_v40  ;;  %v2596_v34 = vadd.f32 %v1915_v2, %v1857_v31 }
 0x388   : > { %v1564_v41 = vpop.f32.mrf.mxu1 }
 0x389   : > { %v2592_v30 = vadd.f32 %v1857_v31, %v1564_v41 }
 0x38b   : > { %1602 = vmax.xlane.f32.xlu1 %v2592_v30  ;;  %1604 = vmax.xlane.f32.xlu0 %v2590_v45 }
 0x38f   : > { %1606 = vmax.xlane.f32.xlu1 %v2596_v34 }
 0x3de   : > { %v1581_v35 = vpop.xlane.xlu1 %1580 }
 0x3df   : > { %v1610_v36 = vsub.f32 %v1522_v9, %v1581_v35 }
 0x3e0   : > { %v1577_v55 = vpop.xlane.xlu0 %1576 }
 0x3e1   : > { %v1628_v56 = vmul.f32 1.442695, %v1610_v36  ;;  %v1608_v60 = vsub.f32 %v1514_v11, %v1577_v55 }
 0x3e2   : > { %v1583_v49 = vpop.xlane.xlu1 %1582 }
 0x3e3   : > { %2001 = vpow2.f32 %v1628_v56  ;;  %v1624_v37 = vmul.f32 1.442695, %v1608_v60  ;;  %v1611_v51 = vsub.f32 %v1525_v33, %v1583_v49 }
 0x3e4   : > { %v1579_v38 = vpop.xlane.xlu0 %1578 }
 0x3e5   : > { %v1630_v52 = vmul.f32 1.442695, %v1611_v51  ;;  %v1609_v42 = vsub.f32 %v1517_v13, %v1579_v38  ;;  %2003 = vpow2.f32 %v1624_v37 }
 0x3e7   : > { %2005 = vpow2.f32 %v1630_v52  ;;  %v1626_v43 = vmul.f32 1.442695, %v1609_v42 }
 0x3e9   : > { %2007 = vpow2.f32 %v1626_v43 }
 0x3ee   : > { %v1589_v44 = vpop.xlane.xlu0 %1588 }
 0x3ef   : > { %v1614_v46 = vsub.f32 %v1538_v14, %v1589_v44 }
 0x3f0   : > { %v2599_v54 = vpop.eup %2001 }
 0x3f1   : > { %v1636_v47 = vmul.f32 1.442695, %v1614_v46  ;;  %1660 = vadd.xlane.f32.xlu0 %v2599_v54 }
 0x3f2   : > { %v1591_v48 = vpop.xlane.xlu1 %1590  ;;  %v1585_v50 = vpop.xlane.xlu0 %1584 }
 0x3f3   : > { %v2602_v57 = vpop.eup %2003  ;;  %2009 = vpow2.f32 %v1636_v47  ;;  %v1615_v58 = vsub.f32 %v1541_v18, %v1591_v48  ;;  %v1612_v59 = vsub.f32 %v1530_v17, %v1585_v50 }
 0x3f4   : > { %v2604_v61 = vpop.eup %2005 }
 0x3f5   : > { %v1638_v62 = vmul.f32 1.442695, %v1615_v58  ;;  %v1632_v63 = vmul.f32 1.442695, %v1612_v59  ;;  %1662 = vadd.xlane.f32.xlu1 %v2604_v61  ;;  %1656 = vadd.xlane.f32.xlu0 %v2602_v57 }
 0x3f6   : > { %v1587_v0 = vpop.xlane.xlu1 %1586  ;;  %v2609_v3 = vpop.eup %2007 }
 0x3f7   : > { %2011 = vpow2.f32 %v1638_v62  ;;  %v1613_v1 = vsub.f32 %v2572_v20, %v1587_v0 }
 0x3f8   : > { %2013 = vpow2.f32 %v1632_v63 }
 0x3f9   : > { %v1634_v4 = vmul.f32 1.442695, %v1613_v1  ;;  %1658 = vadd.xlane.f32.xlu1 %v2609_v3 }
 0x3fb   : > { %2015 = vpow2.f32 %v1634_v4 }
 0x3fe   : > { %v1597_v5 = vpop.xlane.xlu0 %1596 }
 0x3ff   : > { %v1618_v6 = vsub.f32 %v2575_v22, %v1597_v5 }
 0x400   : > { %v2613_v7 = vpop.eup %2009 }
 0x401   : > { %v1644_v31 = vmul.f32 1.442695, %v1618_v6  ;;  %1668 = vadd.xlane.f32.xlu0 %v2613_v7 }
 0x402   : > { %v1599_v8 = vpop.xlane.xlu1 %1598  ;;  %v1593_v9 = vpop.xlane.xlu0 %1592 }
 0x403   : > { %2017 = vpow2.f32 %v1644_v31  ;;  %v1619_v10 = vsub.f32 %v2580_v26, %v1599_v8  ;;  %v1616_v11 = vsub.f32 %v2578_v25, %v1593_v9 }
 0x404   : > { %v2618_v32 = vpop.eup %2011 }
 0x405   : > { %v2620_v33 = vpop.eup %2013  ;;  %v1646_v12 = vmul.f32 1.442695, %v1619_v10  ;;  %v1640_v13 = vmul.f32 1.442695, %v1616_v11  ;;  %1670 = vadd.xlane.f32.xlu1 %v2618_v32 }
 0x406   : > { %1664 = vadd.xlane.f32.xlu0 %v2620_v33  ;;  %v1595_v53 = vpop.xlane.xlu1 %1594 }
 0x407   : > { %2019 = vpow2.f32 %v1646_v12  ;;  %v1617_v14 = vsub.f32 %v2584_v28, %v1595_v53 }
 0x408   : > { %v2625_v15 = vpop.eup %2015  ;;  %2021 = vpow2.f32 %v1640_v13 }
 0x409   : > { %v1642_v16 = vmul.f32 1.442695, %v1617_v14  ;;  %1666 = vadd.xlane.f32.xlu1 %v2625_v15 }
 0x40b   : > { %2023 = vpow2.f32 %v1642_v16 }
 0x410   : > { %v2628_v17 = vpop.eup %2017  ;;  %v1601_v18 = vpop.xlane.xlu0 %1600 }
 0x411   : > { %v1620_v19 = vsub.f32 %v2587_v40, %v1601_v18  ;;  %1676 = vadd.xlane.f32.xlu0 %v2628_v17 }
 0x413   : > { %v1648_v20 = vmul.f32 1.442695, %v1620_v19 }
 0x414   : > { %v2632_v21 = vpop.eup %2019  ;;  %v1603_v22 = vpop.xlane.xlu1 %1602 }
 0x415   : > { %v1605_v23 = vpop.xlane.xlu0 %1604  ;;  %v2634_v24 = vpop.eup %2021  ;;  %2025 = vpow2.f32 %v1648_v20  ;;  %v1621_v25 = vsub.f32 %v2592_v30, %v1603_v22  ;;  %1678 = vadd.xlane.f32.xlu1 %v2632_v21 }
 0x416   : > { %v1622_v26 = vsub.f32 %v2590_v45, %v1605_v23  ;;  %1672 = vadd.xlane.f32.xlu0 %v2634_v24 }
 0x417   : > { %v1650_v27 = vmul.f32 1.442695, %v1621_v25 }
 0x418   : > { %v1652_v28 = vmul.f32 1.442695, %v1622_v26  ;;  %v2640_v29 = vpop.eup %2023  ;;  %v1607_v39 = vpop.xlane.xlu1 %1606 }
 0x419   : > { %2027 = vpow2.f32 %v1650_v27  ;;  %v1623_v40 = vsub.f32 %v2596_v34, %v1607_v39  ;;  %1674 = vadd.xlane.f32.xlu1 %v2640_v29 }
 0x41a   : > { %2029 = vpow2.f32 %v1652_v28 }
 0x41b   : > { %v1654_v2 = vmul.f32 1.442695, %v1623_v40 }
 0x41d   : > { %2031 = vpow2.f32 %v1654_v2 }
 0x422   : > { %v2644_v41 = vpop.eup %2025 }
 0x423   : > { %1680 = vadd.xlane.f32.xlu0 %v2644_v41 }
 0x426   : > { %v2647_v45 = vpop.eup %2027 }
 0x427   : > { %v2649_v30 = vpop.eup %2029  ;;  %1682 = vadd.xlane.f32.xlu1 %v2647_v45 }
 0x428   : > { %1684 = vadd.xlane.f32.xlu0 %v2649_v30 }
 0x42a   : > { %v2653_v35 = vpop.eup %2031 }
 0x42b   : > { %1686 = vadd.xlane.f32.xlu1 %v2653_v35 }
 0x47a   : > { %v1661_v34 = vpop.xlane.xlu0 %1660 }
 0x47b   : > { %2033 = vrcp.f32 %v1661_v34 }
 0x47e   : > { %v1663_v36 = vpop.xlane.xlu1 %1662  ;;  %v1657_v55 = vpop.xlane.xlu0 %1656 }
 0x47f   : > { %2035 = vrcp.f32 %v1663_v36 }
 0x480   : > { %2037 = vrcp.f32 %v1657_v55 }
 0x482   : > { %v1659_v56 = vpop.xlane.xlu1 %1658 }
 0x483   : > { %2039 = vrcp.f32 %v1659_v56 }
 0x488   : > { %v2034_v60 = vpop.eup %2033 }
 0x489   : > { %v1693_v49 = vmul.f32 %v2034_v60, %v2599_v54 }
 0x48a   : > { %v1669_v37 = vpop.xlane.xlu0 %1668 }
 0x48b   : > { %1722 = vst [vmem:[%s2660_s29 + $0x10] sm:$0xff] %v1693_v49  ;;  %2041 = vrcp.f32 %v1669_v37 }
 0x48c   : > { %v2036_v51 = vpop.eup %2035 }
 0x48d   : > { %v2038_v38 = vpop.eup %2037  ;;  %v1695_v52 = vmul.f32 %v2036_v51, %v2604_v61 }
 0x48e   : > { %v1689_v42 = vmul.f32 %v2038_v38, %v2602_v57  ;;  %v1671_v43 = vpop.xlane.xlu1 %1670 }
 0x48f   : > { %1723 = vst [vmem:[%s2660_s29 + $0x18] sm:$0xff] %v1695_v52  ;;  %2043 = vrcp.f32 %v1671_v43  ;;  %v1665_v44 = vpop.xlane.xlu0 %1664 }
 0x490   : > { %v2040_v46 = vpop.eup %2039  ;;  %1720 = vst [vmem:[%s2660_s29] sm:$0xff] %v1689_v42  ;;  %2045 = vrcp.f32 %v1665_v44 }
 0x491   : > { %v1691_v54 = vmul.f32 %v2040_v46, %v2609_v3 }
 0x492   : > { %v1667_v47 = vpop.xlane.xlu1 %1666 }
 0x493   : > { %1721 = vst [vmem:[%s2660_s29 + $0x8] sm:$0xff] %v1691_v54  ;;  %2047 = vrcp.f32 %v1667_v47 }
 0x498   : > { %v2042_v48 = vpop.eup %2041 }
 0x499   : > { %v1701_v50 = vmul.f32 %v2042_v48, %v2613_v7 }
 0x49a   : > { %v1677_v58 = vpop.xlane.xlu0 %1676 }
 0x49b   : > { %1726 = vst [vmem:[%s2660_s29 + $0x30] sm:$0xff] %v1701_v50  ;;  %2049 = vrcp.f32 %v1677_v58 }
 0x49c   : > { %v2044_v57 = vpop.eup %2043 }
 0x49d   : > { %v2046_v59 = vpop.eup %2045  ;;  %v1703_v61 = vmul.f32 %v2044_v57, %v2618_v32 }
 0x49e   : > { %v1697_v62 = vmul.f32 %v2046_v59, %v2620_v33  ;;  %v1679_v63 = vpop.xlane.xlu1 %1678 }
 0x49f   : > { %1727 = vst [vmem:[%s2660_s29 + $0x38] sm:$0xff] %v1703_v61  ;;  %2051 = vrcp.f32 %v1679_v63  ;;  %v1673_v0 = vpop.xlane.xlu0 %1672 }
 0x4a0   : > { %v2048_v1 = vpop.eup %2047  ;;  %1724 = vst [vmem:[%s2660_s29 + $0x20] sm:$0xff] %v1697_v62  ;;  %2053 = vrcp.f32 %v1673_v0 }
 0x4a1   : > { %v1699_v3 = vmul.f32 %v2048_v1, %v2625_v15 }
 0x4a2   : > { %v1675_v4 = vpop.xlane.xlu1 %1674 }
 0x4a3   : > { %1725 = vst [vmem:[%s2660_s29 + $0x28] sm:$0xff] %v1699_v3  ;;  %2055 = vrcp.f32 %v1675_v4 }
 0x4a8   : > { %v2050_v5 = vpop.eup %2049 }
 0x4a9   : > { %v1709_v6 = vmul.f32 %v2050_v5, %v2628_v17 }
 0x4ab   : > { %1730 = vst [vmem:[%s2660_s29 + $0x50] sm:$0xff] %v1709_v6 }
 0x4ac   : > { %v2052_v7 = vpop.eup %2051  ;;  %v1681_v31 = vpop.xlane.xlu0 %1680 }
 0x4ad   : > { %v2054_v8 = vpop.eup %2053  ;;  %v1711_v9 = vmul.f32 %v2052_v7, %v2632_v21  ;;  %2057 = vrcp.f32 %v1681_v31 }
 0x4ae   : > { %v1705_v10 = vmul.f32 %v2054_v8, %v2634_v24 }
 0x4af   : > { %1731 = vst [vmem:[%s2660_s29 + $0x58] sm:$0xff] %v1711_v9 }
 0x4b0   : > { %v2056_v11 = vpop.eup %2055  ;;  %1728 = vst [vmem:[%s2660_s29 + $0x40] sm:$0xff] %v1705_v10  ;;  %v1683_v32 = vpop.xlane.xlu1 %1682 }
 0x4b1   : > { %v1707_v33 = vmul.f32 %v2056_v11, %v2640_v29  ;;  %2059 = vrcp.f32 %v1683_v32  ;;  %v1685_v12 = vpop.xlane.xlu0 %1684 }
 0x4b2   : > { %2061 = vrcp.f32 %v1685_v12 }
 0x4b3   : > { %1729 = vst [vmem:[%s2660_s29 + $0x48] sm:$0xff] %v1707_v33 }
 0x4b4   : > { %v1687_v13 = vpop.xlane.xlu1 %1686 }
 0x4b5   : > { %2063 = vrcp.f32 %v1687_v13 }
 0x4ba   : > { %v2058_v53 = vpop.eup %2057 }
 0x4bb   : > { %v1713_v14 = vmul.f32 %v2058_v53, %v2644_v41 }
 0x4bd   : > { %1732 = vst [vmem:[%s2660_s29 + $0x60] sm:$0xff] %v1713_v14 }
 0x4be   : > { %v2060_v15 = vpop.eup %2059 }
 0x4bf   : > { %v2062_v16 = vpop.eup %2061  ;;  %v1715_v17 = vmul.f32 %v2060_v15, %v2647_v45 }
 0x4c0   : > { %v1717_v18 = vmul.f32 %v2062_v16, %v2649_v30 }
 0x4c1   : > { %1733 = vst [vmem:[%s2660_s29 + $0x68] sm:$0xff] %v1715_v17 }
 0x4c2   : > { %v2064_v19 = vpop.eup %2063  ;;  %1734 = vst [vmem:[%s2660_s29 + $0x70] sm:$0xff] %v1717_v18 }
 0x4c3   : > { %v1719_v20 = vmul.f32 %v2064_v19, %v2653_v35 }
 0x4c5   : > { %1735 = vst [vmem:[%s2660_s29 + $0x78] sm:$0xff] %v1719_v20 }
 0x4c6 PF: > { %s19_s30 = sadd.s32 1, %s2071_s30  }
 0x4c7   : > { %p16_p4 = scmp.ge.s32.totalorder %s19_s30, 4  }
 0x4c9   :  { %18 = sbr.rel (!%p16_p4) target bundleno = 1 (0x1), region = 86 }

</bundles_post_ra>
